<compile_context>
chip_gen: v5e
topology: v5e:2x2
jax: 0.10.0
libtpu: 0.0.40
codegen_flags: <defaults>
</compile_context>

<pallas_src>
import functools
import math

import jax
import jax.numpy as jnp
from jax import lax
from jax.experimental import pallas as pl
from jax.experimental.pallas import tpu as pltpu


_VMEM_BUDGET_BYTES = 16 * 1024 * 1024   # conservative: headroom even on v7x's 64 MiB


def fused_lstm_fc_kernel(gx0_ref, whh_ref, wih_ref, b_ref, wfc_ref, bfc_ref,
                         out_ref, h_ref, c_ref, y_ref,
                         *, t_chunk, num_layers, seq_len, padded_len):
    """One grid step = one chunk of t_chunk timesteps through ALL layers (+ FC).

    gx0_ref : [t_chunk*B, 4H] f32  precomputed layer-0 input gates (time-major rows)
    whh_ref : [L, H, 4H] bf16      recurrent weights, all layers
    wih_ref : [max(L-1,1), H, 4H] bf16  input weights for layers 1..L-1
    b_ref   : [max(L-1,1), 1, 4H] f32   combined biases for layers 1..L-1
    wfc_ref : [H, O] bf16,  bfc_ref : [1, O] f32
    out_ref : [B, O] f32 (resident; written on the last grid step only)
    h_ref/c_ref : [L, B, H] f32 persistent state,  y_ref : [t_chunk*B, H] f32 slab
    """
    s = pl.program_id(0)

    @pl.when(s == 0)
    def _init():
        h_ref[...] = jnp.zeros_like(h_ref)
        c_ref[...] = jnp.zeros_like(c_ref)

    L, B, H = h_ref.shape
    G = 4 * H
    t0 = s * t_chunk
    mask_tail = padded_len != seq_len          # static python bool

    # Hoisted gate-activation constants: ONE EUP tanh traversal per timestep
    # covers all four gates (PyTorch order i,f,g,o):
    #   i/f/o lanes: sigmoid(x) = 0.5*tanh(0.5*x) + 0.5
    #   g lanes    : tanh(x)
    lane = lax.broadcasted_iota(jnp.int32, (B, G), 1)
    is_g = jnp.logical_and(lane >= 2 * H, lane < 3 * H)
    scale = jnp.where(is_g, 1.0, 0.5).astype(jnp.float32)
    shift = jnp.where(is_g, 0.0, 0.5).astype(jnp.float32)

    def run_layer(layer, get_gx, write_y):
        whh = whh_ref[layer]                   # [H, 4H] bf16, loaded once per chunk
        # TODO(synk): hold whh resident in the MXU across the chunk with
        # pltpu.matmul_push_rhs / matmul_acc_lhs / matmul_pop instead of
        # re-latching the RHS every timestep.
        h = h_ref[layer]
        c = c_ref[layer]
        # Fully unrolled Python loop: `t` is a static int, so every gx / y access is
        # a static sublane slice.  TODO(synk): switch to a bounded-unroll
        # lax.fori_loop once t_chunk / B*H grow enough to pressure vregs.
        for t in range(t_chunk):
            gates = get_gx(t) + jnp.dot(h.astype(whh.dtype), whh,
                                        preferred_element_type=jnp.float32)
            a = jnp.tanh(scale * gates)        # the only [B,4H] EUP pass this step
            act = scale * a + shift
            i_g = act[:, 0 * H:1 * H]
            f_g = act[:, 1 * H:2 * H]
            g_g = act[:, 2 * H:3 * H]
            o_g = act[:, 3 * H:4 * H]
            c_new = f_g * c + i_g * g_g
            h_new = o_g * jnp.tanh(c_new)
            if mask_tail:
                valid = (t0 + t) < seq_len     # freeze state on padded tail steps
                h_new = jnp.where(valid, h_new, h)
                c_new = jnp.where(valid, c_new, c)
            h, c = h_new, c_new
            if write_y:
                y_ref[pl.ds(t * B, B), :] = h  # VMEM-only; never round-trips HBM
        h_ref[layer] = h
        c_ref[layer] = c
        return h

    # Layer 0: its input projection (x @ W_ih + b) was hoisted out of the kernel.
    h_last = run_layer(0, lambda t: gx0_ref[pl.ds(t * B, B), :],
                       write_y=(num_layers > 1))

    # Layers 1..L-1: project the whole chunk's hidden slab with ONE batched MXU
    # matmul, then run that layer's serial recurrence on precomputed gates.
    for l in range(1, num_layers):
        y_bf16 = y_ref[...].astype(jnp.bfloat16)               # [t_chunk*B, H]
        gx = jnp.dot(y_bf16, wih_ref[l - 1],
                     preferred_element_type=jnp.float32) + b_ref[l - 1]
        h_last = run_layer(l, lambda t, gx=gx: gx[t * B:(t + 1) * B, :],
                           write_y=(l < num_layers - 1))

    # Fused FC head on the final hidden state of the last layer.
    @pl.when(s == pl.num_programs(0) - 1)
    def _finalize():
        wfc = wfc_ref[...]
        out_ref[...] = (jnp.dot(h_last.astype(wfc.dtype), wfc,
                                preferred_element_type=jnp.float32)
                        + bfc_ref[...]).astype(out_ref.dtype)


def choose_t_chunk(seq_len, batch, hidden, cap=32):
    """Largest t_chunk such that (t_chunk * B) is 8-sublane aligned and the
    double-buffered gx0 chunk stays well inside the VMEM budget."""
    unit = max(1, 8 // math.gcd(batch, 8))            # 8-row alignment of gx0 blocks
    per_t_bytes = batch * 4 * hidden * 4               # one timestep of f32 gates
    budget_t = max(unit, (_VMEM_BUDGET_BYTES // 4) // (2 * per_t_bytes))
    t_chunk = max(unit, (min(cap, budget_t) // unit) * unit)
    if seq_len <= t_chunk:                             # single chunk covers everything
        t_chunk = max(unit, -(-seq_len // unit) * unit)
    return t_chunk


def init_params(key, input_size, hidden_size, num_layers, output_size):
    """PyTorch-like uniform(-1/sqrt(H), 1/sqrt(H)) init; weights stored transposed."""
    H = hidden_size
    k = 1.0 / jnp.sqrt(jnp.asarray(H, jnp.float32))
    params = {"lstm": []}
    for layer in range(num_layers):
        d_in = input_size if layer == 0 else H
        key, k1, k2, k3, k4 = jax.random.split(key, 5)
        w_ih = jax.random.uniform(k1, (d_in, 4 * H), jnp.float32, -k, k)
        w_hh = jax.random.uniform(k2, (H, 4 * H), jnp.float32, -k, k)
        b_ih = jax.random.uniform(k3, (4 * H,), jnp.float32, -k, k)
        b_hh = jax.random.uniform(k4, (4 * H,), jnp.float32, -k, k)
        params["lstm"].append((w_ih, w_hh, (b_ih + b_hh).reshape(1, 4 * H)))
    key, k5, k6 = jax.random.split(key, 3)
    params["fc_w"] = jax.random.uniform(k5, (H, output_size), jnp.float32, -k, k)
    params["fc_b"] = jax.random.uniform(k6, (output_size,), jnp.float32, -k, k
                                        ).reshape(1, output_size)
    return params


@functools.partial(jax.jit, static_argnames=("t_chunk",))
def rnn_forward(x, params, t_chunk):
    """x: [B, T, input_size] -> [B, output_size] (matches PyTorch RNN.forward)."""
    x = x.astype(jnp.float32)
    B, T, D = x.shape
    lstm = params["lstm"]
    L = len(lstm)
    H = lstm[0][1].shape[0]
    O = params["fc_w"].shape[1]

    padded_len = -(-T // t_chunk) * t_chunk
    grid = (padded_len // t_chunk,)

    # Hoisted layer-0 input projection: one big bf16 matmul (f32 accumulate).
    # Rows are time-major (row = t*B + b), so each chunk block's minor dims are
    # (t_chunk*B, 4H) = exact (8,128) tiles (no sublane-padding in the DMA).
    w_ih0, _, b0 = lstm[0]
    seq2d = jnp.transpose(x, (1, 0, 2)).reshape(T * B, D)
    gx0 = jnp.dot(seq2d.astype(jnp.bfloat16), w_ih0.astype(jnp.bfloat16),
                  preferred_element_type=jnp.float32) + b0
    # TODO(synk): optionally store gx0 in bf16 to halve the HBM/DMA footprint once
    # validated against the reference.
    if padded_len != T:
        gx0 = jnp.pad(gx0, ((0, (padded_len - T) * B), (0, 0)))

    whh_all = jnp.stack([w_hh for (_, w_hh, _) in lstm]).astype(jnp.bfloat16)
    if L > 1:
        wih_rest = jnp.stack([lstm[l][0] for l in range(1, L)]).astype(jnp.bfloat16)
        b_rest = jnp.stack([lstm[l][2] for l in range(1, L)])
    else:
        wih_rest = jnp.zeros((1, H, 4 * H), jnp.bfloat16)
        b_rest = jnp.zeros((1, 1, 4 * H), jnp.float32)

    kernel = functools.partial(fused_lstm_fc_kernel, t_chunk=t_chunk,
                               num_layers=L, seq_len=T, padded_len=padded_len)

    # TODO(synk): add a leading "parallel" batch-tile grid axis (v7x megacore) and
    # split the FC writeback per batch tile once B >= 16; with B=2 one TC is right.
    return pl.pallas_call(
        kernel,
        out_shape=jax.ShapeDtypeStruct((B, O), jnp.float32),
        grid_spec=pltpu.PrefetchScalarGridSpec(
            num_scalar_prefetch=0,
            grid=grid,
            in_specs=[
                pl.BlockSpec((t_chunk * B, 4 * H), lambda s: (s, 0)),
                pl.BlockSpec(whh_all.shape, lambda s: (0, 0, 0)),
                pl.BlockSpec(wih_rest.shape, lambda s: (0, 0, 0)),
                pl.BlockSpec(b_rest.shape, lambda s: (0, 0, 0)),
                pl.BlockSpec((H, O), lambda s: (0, 0)),
                pl.BlockSpec((1, O), lambda s: (0, 0)),
            ],
            out_specs=pl.BlockSpec((B, O), lambda s: (0, 0)),
            scratch_shapes=[
                pltpu.VMEM((L, B, H), jnp.float32),          # h state per layer
                pltpu.VMEM((L, B, H), jnp.float32),          # c state per layer
                pltpu.VMEM((t_chunk * B, H), jnp.float32),   # inter-layer chunk slab
            ],
        ),
        compiler_params=pltpu.CompilerParams(
            dimension_semantics=("arbitrary",),              # serial recurrence over time
            vmem_limit_bytes=_VMEM_BUDGET_BYTES,
        ),
    )(gx0, whh_all, wih_rest, b_rest,
      params["fc_w"].astype(jnp.bfloat16), params["fc_b"])


def _reference_forward(x, params):
    """Pure-JAX reference with the same bf16-matmul / f32-accumulate math."""
    x = x.astype(jnp.float32)
    seq = jnp.transpose(x, (1, 0, 2))
    n_layers = len(params["lstm"])
    out = None
    for li, (w_ih, w_hh, b) in enumerate(params["lstm"]):
        T, B, D = seq.shape
        H = w_hh.shape[0]
        gx = (jnp.dot(seq.reshape(T * B, D).astype(jnp.bfloat16),
                      w_ih.astype(jnp.bfloat16),
                      preferred_element_type=jnp.float32) + b).reshape(T, B, 4 * H)
        h = jnp.zeros((B, H), jnp.float32)
        c = jnp.zeros((B, H), jnp.float32)
        ys = []
        for t in range(T):
            gates = gx[t] + jnp.dot(h.astype(jnp.bfloat16), w_hh.astype(jnp.bfloat16),
                                    preferred_element_type=jnp.float32)
            i = jax.nn.sigmoid(gates[:, 0 * H:1 * H])
            f = jax.nn.sigmoid(gates[:, 1 * H:2 * H])
            g = jnp.tanh(gates[:, 2 * H:3 * H])
            o = jax.nn.sigmoid(gates[:, 3 * H:4 * H])
            c = f * c + i * g
            h = o * jnp.tanh(c)
            ys.append(h)
        seq = jnp.stack(ys, axis=0)
        if li == n_layers - 1:
            out = (jnp.dot(h.astype(jnp.bfloat16),
                           params["fc_w"].astype(jnp.bfloat16),
                           preferred_element_type=jnp.float32) + params["fc_b"])
    return out


if __name__ == "__main__":
    # Small shapes consistent with the module: batch=2, seq=8, input=16,
    # hidden=32, num_layers=2, output=4.
    B, T, INPUT, HIDDEN, LAYERS, OUTPUT = 2, 8, 16, 32, 2, 4

    key = jax.random.PRNGKey(0)
    key, xkey = jax.random.split(key)
    x = jax.random.normal(xkey, (B, T, INPUT), jnp.float32)

    params = init_params(key, INPUT, HIDDEN, LAYERS, OUTPUT)

    t_chunk = choose_t_chunk(T, B, HIDDEN)     # T=8, B=2 -> one 8-step chunk
    out = rnn_forward(x, params, t_chunk)
    out = jax.block_until_ready(out)

    ref = _reference_forward(x, params)
    assert out.shape == (B, OUTPUT)
    assert jnp.allclose(out, ref, atol=2e-3, rtol=2e-3), (
        f"max abs err {jnp.max(jnp.abs(out - ref))}")

    print("KERNEL_OK")
</pallas_src>

<mosaic_0001>
module attributes {stable_mosaic.version = 11 : i64} {
  func.func @fused_lstm_fc_kernel(%arg0: i32, %arg1: memref<16x128xf32, #tpu.memory_space<vmem>>, %arg2: memref<2x32x128xbf16, #tpu.memory_space<vmem>>, %arg3: memref<1x32x128xbf16, #tpu.memory_space<vmem>>, %arg4: memref<1x1x128xf32, #tpu.memory_space<vmem>>, %arg5: memref<32x4xbf16, #tpu.memory_space<vmem>>, %arg6: memref<1x4xf32, #tpu.memory_space<vmem>>, %arg7: memref<2x4xf32, #tpu.memory_space<vmem>>, %arg8: memref<2x2x32xf32, #tpu.memory_space<vmem>>, %arg9: memref<2x2x32xf32, #tpu.memory_space<vmem>>, %arg10: memref<16x32xf32, #tpu.memory_space<vmem>>) attributes {dimension_semantics = [#tpu.dimension_semantics<arbitrary>], iteration_bounds = array<i64: 1>, scalar_prefetch = 0 : i64, scratch_operands = 3 : i64, tpu.core_type = #tpu.core_type<tc>, window_params = [{transform_indices = @transform_0, window_bounds = array<i64: 16, 128>}, {pipeline_mode = #tpu.pipeline_mode<synchronous>, transform_indices = @transform_1, window_bounds = array<i64: 2, 32, 128>}, {pipeline_mode = #tpu.pipeline_mode<synchronous>, transform_indices = @transform_2, window_bounds = array<i64: 1, 32, 128>}, {pipeline_mode = #tpu.pipeline_mode<synchronous>, transform_indices = @transform_3, window_bounds = array<i64: 1, 1, 128>}, {pipeline_mode = #tpu.pipeline_mode<synchronous>, transform_indices = @transform_4, window_bounds = array<i64: 32, 4>}, {pipeline_mode = #tpu.pipeline_mode<synchronous>, transform_indices = @transform_5, window_bounds = array<i64: 1, 4>}, {pipeline_mode = #tpu.pipeline_mode<synchronous>, transform_indices = @transform_6, window_bounds = array<i64: 2, 4>}]} {
    %c0_i32 = arith.constant 0 : i32
    %0 = arith.cmpi eq, %arg0, %c0_i32 : i32
    %1 = arith.extui %0 : i1 to i32
    %c0_i32_0 = arith.constant 0 : i32
    %2 = arith.cmpi ne, %1, %c0_i32_0 : i32
    scf.if %2 {
      %cst_84 = arith.constant 0.000000e+00 : f32
      %331 = vector.broadcast %cst_84 : f32 to vector<2x2x32xf32>
      %c0_85 = arith.constant 0 : index
      %c0_86 = arith.constant 0 : index
      %c0_87 = arith.constant 0 : index
      %332 = vector.load %arg8[%c0_85, %c0_86, %c0_87] : memref<2x2x32xf32, #tpu.memory_space<vmem>>, vector<2x2x32xf32>
      tpu.vector_store %arg8[%c0_85, %c0_86, %c0_87], %331 {strides = array<i32>} : memref<2x2x32xf32, #tpu.memory_space<vmem>>, vector<2x2x32xf32>,
      %cst_88 = arith.constant 0.000000e+00 : f32
      %333 = vector.broadcast %cst_88 : f32 to vector<2x2x32xf32>
      %c0_89 = arith.constant 0 : index
      %c0_90 = arith.constant 0 : index
      %c0_91 = arith.constant 0 : index
      %334 = vector.load %arg9[%c0_89, %c0_90, %c0_91] : memref<2x2x32xf32, #tpu.memory_space<vmem>>, vector<2x2x32xf32>
      tpu.vector_store %arg9[%c0_89, %c0_90, %c0_91], %333 {strides = array<i32>} : memref<2x2x32xf32, #tpu.memory_space<vmem>>, vector<2x2x32xf32>,
    } else {
    }
    %3 = tpu.iota {dimensions = array<i32: 1>} : vector<2x128xi32>
    %c64_i32 = arith.constant 64 : i32
    %4 = vector.broadcast %c64_i32 : i32 to vector<2x128xi32>
    %5 = arith.cmpi sge, %3, %4 : vector<2x128xi32>
    %c96_i32 = arith.constant 96 : i32
    %6 = vector.broadcast %c96_i32 : i32 to vector<2x128xi32>
    %7 = arith.cmpi slt, %3, %6 : vector<2x128xi32>
    %8 = arith.andi %5, %7 : vector<2x128xi1>
    %cst = arith.constant 1.000000e+00 : f32
    %cst_1 = arith.constant 5.000000e-01 : f32
    %9 = vector.broadcast %cst : f32 to vector<2x128xf32>
    %10 = vector.broadcast %cst_1 : f32 to vector<2x128xf32>
    %11 = arith.select %8, %9, %10 : vector<2x128xi1>, vector<2x128xf32>
    %cst_2 = arith.constant 0.000000e+00 : f32
    %cst_3 = arith.constant 5.000000e-01 : f32
    %12 = vector.broadcast %cst_2 : f32 to vector<2x128xf32>
    %13 = vector.broadcast %cst_3 : f32 to vector<2x128xf32>
    %14 = arith.select %8, %12, %13 : vector<2x128xi1>, vector<2x128xf32>
    %c0 = arith.constant 0 : index
    %c0_4 = arith.constant 0 : index
    %c0_5 = arith.constant 0 : index
    %15 = vector.load %arg2[%c0, %c0_4, %c0_5] : memref<2x32x128xbf16, #tpu.memory_space<vmem>>, vector<1x32x128xbf16>
    %16 = vector.shape_cast %15 : vector<1x32x128xbf16> to vector<32x128xbf16>
    %c0_6 = arith.constant 0 : index
    %c0_7 = arith.constant 0 : index
    %c0_8 = arith.constant 0 : index
    %17 = vector.load %arg8[%c0_6, %c0_7, %c0_8] : memref<2x2x32xf32, #tpu.memory_space<vmem>>, vector<1x2x32xf32>
    %18 = vector.shape_cast %17 : vector<1x2x32xf32> to vector<2x32xf32>
    %c0_9 = arith.constant 0 : index
    %c0_10 = arith.constant 0 : index
    %c0_11 = arith.constant 0 : index
    %19 = vector.load %arg9[%c0_9, %c0_10, %c0_11] : memref<2x2x32xf32, #tpu.memory_space<vmem>>, vector<1x2x32xf32>
    %20 = vector.shape_cast %19 : vector<1x2x32xf32> to vector<2x32xf32>
    %c0_12 = arith.constant 0 : index
    %c0_13 = arith.constant 0 : index
    %21 = vector.load %arg1[%c0_12, %c0_13] : memref<16x128xf32, #tpu.memory_space<vmem>>, vector<2x128xf32>
    %22 = arith.truncf %18 : vector<2x32xf32> to vector<2x32xbf16>
    %cst_14 = arith.constant dense<0.000000e+00> : vector<2x128xf32>
    %23 = tpu.matmul %22, %16, %cst_14 {dimension_numbers = #tpu.dot_dimension_numbers<[1], [0], [0], [1], [0, 0, 1, 1], [], []>} : vector<2x32xbf16>, vector<32x128xbf16>, vector<2x128xf32> -> vector<2x128xf32>
    %24 = arith.addf %21, %23 : vector<2x128xf32>
    %25 = arith.mulf %11, %24 : vector<2x128xf32>
    %26 = math.tanh %25 : vector<2x128xf32>
    %27 = arith.mulf %11, %26 : vector<2x128xf32>
    %28 = arith.addf %27, %14 : vector<2x128xf32>
    %29 = vector.extract_strided_slice %28 {offsets = [0, 0], sizes = [2, 32], strides = [1, 1]} : vector<2x128xf32> to vector<2x32xf32>
    %30 = vector.extract_strided_slice %28 {offsets = [0, 32], sizes = [2, 32], strides = [1, 1]} : vector<2x128xf32> to vector<2x32xf32>
    %31 = vector.extract_strided_slice %28 {offsets = [0, 64], sizes = [2, 32], strides = [1, 1]} : vector<2x128xf32> to vector<2x32xf32>
    %32 = vector.extract_strided_slice %28 {offsets = [0, 96], sizes = [2, 32], strides = [1, 1]} : vector<2x128xf32> to vector<2x32xf32>
    %33 = arith.mulf %30, %20 : vector<2x32xf32>
    %34 = arith.mulf %29, %31 : vector<2x32xf32>
    %35 = arith.addf %33, %34 : vector<2x32xf32>
    %36 = math.tanh %35 : vector<2x32xf32>
    %37 = arith.mulf %32, %36 : vector<2x32xf32>
    %c0_15 = arith.constant 0 : index
    %c0_16 = arith.constant 0 : index
    %38 = vector.load %arg10[%c0_15, %c0_16] : memref<16x32xf32, #tpu.memory_space<vmem>>, vector<2x32xf32>
    tpu.vector_store %arg10[%c0_15, %c0_16], %37 {strides = array<i32>} : memref<16x32xf32, #tpu.memory_space<vmem>>, vector<2x32xf32>,
    %c2 = arith.constant 2 : index
    %c0_17 = arith.constant 0 : index
    %39 = vector.load %arg1[%c2, %c0_17] : memref<16x128xf32, #tpu.memory_space<vmem>>, vector<2x128xf32>
    %40 = arith.truncf %37 : vector<2x32xf32> to vector<2x32xbf16>
    %cst_18 = arith.constant dense<0.000000e+00> : vector<2x128xf32>
    %41 = tpu.matmul %40, %16, %cst_18 {dimension_numbers = #tpu.dot_dimension_numbers<[1], [0], [0], [1], [0, 0, 1, 1], [], []>} : vector<2x32xbf16>, vector<32x128xbf16>, vector<2x128xf32> -> vector<2x128xf32>
    %42 = arith.addf %39, %41 : vector<2x128xf32>
    %43 = arith.mulf %11, %42 : vector<2x128xf32>
    %44 = math.tanh %43 : vector<2x128xf32>
    %45 = arith.mulf %11, %44 : vector<2x128xf32>
    %46 = arith.addf %45, %14 : vector<2x128xf32>
    %47 = vector.extract_strided_slice %46 {offsets = [0, 0], sizes = [2, 32], strides = [1, 1]} : vector<2x128xf32> to vector<2x32xf32>
    %48 = vector.extract_strided_slice %46 {offsets = [0, 32], sizes = [2, 32], strides = [1, 1]} : vector<2x128xf32> to vector<2x32xf32>
    %49 = vector.extract_strided_slice %46 {offsets = [0, 64], sizes = [2, 32], strides = [1, 1]} : vector<2x128xf32> to vector<2x32xf32>
    %50 = vector.extract_strided_slice %46 {offsets = [0, 96], sizes = [2, 32], strides = [1, 1]} : vector<2x128xf32> to vector<2x32xf32>
    %51 = arith.mulf %48, %35 : vector<2x32xf32>
    %52 = arith.mulf %47, %49 : vector<2x32xf32>
    %53 = arith.addf %51, %52 : vector<2x32xf32>
    %54 = math.tanh %53 : vector<2x32xf32>
    %55 = arith.mulf %50, %54 : vector<2x32xf32>
    %c2_19 = arith.constant 2 : index
    %c0_20 = arith.constant 0 : index
    %56 = vector.load %arg10[%c2_19, %c0_20] : memref<16x32xf32, #tpu.memory_space<vmem>>, vector<2x32xf32>
    tpu.vector_store %arg10[%c2_19, %c0_20], %55 {strides = array<i32>} : memref<16x32xf32, #tpu.memory_space<vmem>>, vector<2x32xf32>,
    %c4 = arith.constant 4 : index
    %c0_21 = arith.constant 0 : index
    %57 = vector.load %arg1[%c4, %c0_21] : memref<16x128xf32, #tpu.memory_space<vmem>>, vector<2x128xf32>
    %58 = arith.truncf %55 : vector<2x32xf32> to vector<2x32xbf16>
    %cst_22 = arith.constant dense<0.000000e+00> : vector<2x128xf32>
    %59 = tpu.matmul %58, %16, %cst_22 {dimension_numbers = #tpu.dot_dimension_numbers<[1], [0], [0], [1], [0, 0, 1, 1], [], []>} : vector<2x32xbf16>, vector<32x128xbf16>, vector<2x128xf32> -> vector<2x128xf32>
    %60 = arith.addf %57, %59 : vector<2x128xf32>
    %61 = arith.mulf %11, %60 : vector<2x128xf32>
    %62 = math.tanh %61 : vector<2x128xf32>
    %63 = arith.mulf %11, %62 : vector<2x128xf32>
    %64 = arith.addf %63, %14 : vector<2x128xf32>
    %65 = vector.extract_strided_slice %64 {offsets = [0, 0], sizes = [2, 32], strides = [1, 1]} : vector<2x128xf32> to vector<2x32xf32>
    %66 = vector.extract_strided_slice %64 {offsets = [0, 32], sizes = [2, 32], strides = [1, 1]} : vector<2x128xf32> to vector<2x32xf32>
    %67 = vector.extract_strided_slice %64 {offsets = [0, 64], sizes = [2, 32], strides = [1, 1]} : vector<2x128xf32> to vector<2x32xf32>
    %68 = vector.extract_strided_slice %64 {offsets = [0, 96], sizes = [2, 32], strides = [1, 1]} : vector<2x128xf32> to vector<2x32xf32>
    %69 = arith.mulf %66, %53 : vector<2x32xf32>
    %70 = arith.mulf %65, %67 : vector<2x32xf32>
    %71 = arith.addf %69, %70 : vector<2x32xf32>
    %72 = math.tanh %71 : vector<2x32xf32>
    %73 = arith.mulf %68, %72 : vector<2x32xf32>
    %c4_23 = arith.constant 4 : index
    %c0_24 = arith.constant 0 : index
    %74 = vector.load %arg10[%c4_23, %c0_24] : memref<16x32xf32, #tpu.memory_space<vmem>>, vector<2x32xf32>
    tpu.vector_store %arg10[%c4_23, %c0_24], %73 {strides = array<i32>} : memref<16x32xf32, #tpu.memory_space<vmem>>, vector<2x32xf32>,
    %c6 = arith.constant 6 : index
    %c0_25 = arith.constant 0 : index
    %75 = vector.load %arg1[%c6, %c0_25] : memref<16x128xf32, #tpu.memory_space<vmem>>, vector<2x128xf32>
    %76 = arith.truncf %73 : vector<2x32xf32> to vector<2x32xbf16>
    %cst_26 = arith.constant dense<0.000000e+00> : vector<2x128xf32>
    %77 = tpu.matmul %76, %16, %cst_26 {dimension_numbers = #tpu.dot_dimension_numbers<[1], [0], [0], [1], [0, 0, 1, 1], [], []>} : vector<2x32xbf16>, vector<32x128xbf16>, vector<2x128xf32> -> vector<2x128xf32>
    %78 = arith.addf %75, %77 : vector<2x128xf32>
    %79 = arith.mulf %11, %78 : vector<2x128xf32>
    %80 = math.tanh %79 : vector<2x128xf32>
    %81 = arith.mulf %11, %80 : vector<2x128xf32>
    %82 = arith.addf %81, %14 : vector<2x128xf32>
    %83 = vector.extract_strided_slice %82 {offsets = [0, 0], sizes = [2, 32], strides = [1, 1]} : vector<2x128xf32> to vector<2x32xf32>
    %84 = vector.extract_strided_slice %82 {offsets = [0, 32], sizes = [2, 32], strides = [1, 1]} : vector<2x128xf32> to vector<2x32xf32>
    %85 = vector.extract_strided_slice %82 {offsets = [0, 64], sizes = [2, 32], strides = [1, 1]} : vector<2x128xf32> to vector<2x32xf32>
    %86 = vector.extract_strided_slice %82 {offsets = [0, 96], sizes = [2, 32], strides = [1, 1]} : vector<2x128xf32> to vector<2x32xf32>
    %87 = arith.mulf %84, %71 : vector<2x32xf32>
    %88 = arith.mulf %83, %85 : vector<2x32xf32>
    %89 = arith.addf %87, %88 : vector<2x32xf32>
    %90 = math.tanh %89 : vector<2x32xf32>
    %91 = arith.mulf %86, %90 : vector<2x32xf32>
    %c6_27 = arith.constant 6 : index
    %c0_28 = arith.constant 0 : index
    %92 = vector.load %arg10[%c6_27, %c0_28] : memref<16x32xf32, #tpu.memory_space<vmem>>, vector<2x32xf32>
    tpu.vector_store %arg10[%c6_27, %c0_28], %91 {strides = array<i32>} : memref<16x32xf32, #tpu.memory_space<vmem>>, vector<2x32xf32>,
    %c8 = arith.constant 8 : index
    %c0_29 = arith.constant 0 : index
    %93 = vector.load %arg1[%c8, %c0_29] : memref<16x128xf32, #tpu.memory_space<vmem>>, vector<2x128xf32>
    %94 = arith.truncf %91 : vector<2x32xf32> to vector<2x32xbf16>
    %cst_30 = arith.constant dense<0.000000e+00> : vector<2x128xf32>
    %95 = tpu.matmul %94, %16, %cst_30 {dimension_numbers = #tpu.dot_dimension_numbers<[1], [0], [0], [1], [0, 0, 1, 1], [], []>} : vector<2x32xbf16>, vector<32x128xbf16>, vector<2x128xf32> -> vector<2x128xf32>
    %96 = arith.addf %93, %95 : vector<2x128xf32>
    %97 = arith.mulf %11, %96 : vector<2x128xf32>
    %98 = math.tanh %97 : vector<2x128xf32>
    %99 = arith.mulf %11, %98 : vector<2x128xf32>
    %100 = arith.addf %99, %14 : vector<2x128xf32>
    %101 = vector.extract_strided_slice %100 {offsets = [0, 0], sizes = [2, 32], strides = [1, 1]} : vector<2x128xf32> to vector<2x32xf32>
    %102 = vector.extract_strided_slice %100 {offsets = [0, 32], sizes = [2, 32], strides = [1, 1]} : vector<2x128xf32> to vector<2x32xf32>
    %103 = vector.extract_strided_slice %100 {offsets = [0, 64], sizes = [2, 32], strides = [1, 1]} : vector<2x128xf32> to vector<2x32xf32>
    %104 = vector.extract_strided_slice %100 {offsets = [0, 96], sizes = [2, 32], strides = [1, 1]} : vector<2x128xf32> to vector<2x32xf32>
    %105 = arith.mulf %102, %89 : vector<2x32xf32>
    %106 = arith.mulf %101, %103 : vector<2x32xf32>
    %107 = arith.addf %105, %106 : vector<2x32xf32>
    %108 = math.tanh %107 : vector<2x32xf32>
    %109 = arith.mulf %104, %108 : vector<2x32xf32>
    %c8_31 = arith.constant 8 : index
    %c0_32 = arith.constant 0 : index
    %110 = vector.load %arg10[%c8_31, %c0_32] : memref<16x32xf32, #tpu.memory_space<vmem>>, vector<2x32xf32>
    tpu.vector_store %arg10[%c8_31, %c0_32], %109 {strides = array<i32>} : memref<16x32xf32, #tpu.memory_space<vmem>>, vector<2x32xf32>,
    %c10 = arith.constant 10 : index
    %c0_33 = arith.constant 0 : index
    %111 = vector.load %arg1[%c10, %c0_33] : memref<16x128xf32, #tpu.memory_space<vmem>>, vector<2x128xf32>
    %112 = arith.truncf %109 : vector<2x32xf32> to vector<2x32xbf16>
    %cst_34 = arith.constant dense<0.000000e+00> : vector<2x128xf32>
    %113 = tpu.matmul %112, %16, %cst_34 {dimension_numbers = #tpu.dot_dimension_numbers<[1], [0], [0], [1], [0, 0, 1, 1], [], []>} : vector<2x32xbf16>, vector<32x128xbf16>, vector<2x128xf32> -> vector<2x128xf32>
    %114 = arith.addf %111, %113 : vector<2x128xf32>
    %115 = arith.mulf %11, %114 : vector<2x128xf32>
    %116 = math.tanh %115 : vector<2x128xf32>
    %117 = arith.mulf %11, %116 : vector<2x128xf32>
    %118 = arith.addf %117, %14 : vector<2x128xf32>
    %119 = vector.extract_strided_slice %118 {offsets = [0, 0], sizes = [2, 32], strides = [1, 1]} : vector<2x128xf32> to vector<2x32xf32>
    %120 = vector.extract_strided_slice %118 {offsets = [0, 32], sizes = [2, 32], strides = [1, 1]} : vector<2x128xf32> to vector<2x32xf32>
    %121 = vector.extract_strided_slice %118 {offsets = [0, 64], sizes = [2, 32], strides = [1, 1]} : vector<2x128xf32> to vector<2x32xf32>
    %122 = vector.extract_strided_slice %118 {offsets = [0, 96], sizes = [2, 32], strides = [1, 1]} : vector<2x128xf32> to vector<2x32xf32>
    %123 = arith.mulf %120, %107 : vector<2x32xf32>
    %124 = arith.mulf %119, %121 : vector<2x32xf32>
    %125 = arith.addf %123, %124 : vector<2x32xf32>
    %126 = math.tanh %125 : vector<2x32xf32>
    %127 = arith.mulf %122, %126 : vector<2x32xf32>
    %c10_35 = arith.constant 10 : index
    %c0_36 = arith.constant 0 : index
    %128 = vector.load %arg10[%c10_35, %c0_36] : memref<16x32xf32, #tpu.memory_space<vmem>>, vector<2x32xf32>
    tpu.vector_store %arg10[%c10_35, %c0_36], %127 {strides = array<i32>} : memref<16x32xf32, #tpu.memory_space<vmem>>, vector<2x32xf32>,
    %c12 = arith.constant 12 : index
    %c0_37 = arith.constant 0 : index
    %129 = vector.load %arg1[%c12, %c0_37] : memref<16x128xf32, #tpu.memory_space<vmem>>, vector<2x128xf32>
    %130 = arith.truncf %127 : vector<2x32xf32> to vector<2x32xbf16>
    %cst_38 = arith.constant dense<0.000000e+00> : vector<2x128xf32>
    %131 = tpu.matmul %130, %16, %cst_38 {dimension_numbers = #tpu.dot_dimension_numbers<[1], [0], [0], [1], [0, 0, 1, 1], [], []>} : vector<2x32xbf16>, vector<32x128xbf16>, vector<2x128xf32> -> vector<2x128xf32>
    %132 = arith.addf %129, %131 : vector<2x128xf32>
    %133 = arith.mulf %11, %132 : vector<2x128xf32>
    %134 = math.tanh %133 : vector<2x128xf32>
    %135 = arith.mulf %11, %134 : vector<2x128xf32>
    %136 = arith.addf %135, %14 : vector<2x128xf32>
    %137 = vector.extract_strided_slice %136 {offsets = [0, 0], sizes = [2, 32], strides = [1, 1]} : vector<2x128xf32> to vector<2x32xf32>
    %138 = vector.extract_strided_slice %136 {offsets = [0, 32], sizes = [2, 32], strides = [1, 1]} : vector<2x128xf32> to vector<2x32xf32>
    %139 = vector.extract_strided_slice %136 {offsets = [0, 64], sizes = [2, 32], strides = [1, 1]} : vector<2x128xf32> to vector<2x32xf32>
    %140 = vector.extract_strided_slice %136 {offsets = [0, 96], sizes = [2, 32], strides = [1, 1]} : vector<2x128xf32> to vector<2x32xf32>
    %141 = arith.mulf %138, %125 : vector<2x32xf32>
    %142 = arith.mulf %137, %139 : vector<2x32xf32>
    %143 = arith.addf %141, %142 : vector<2x32xf32>
    %144 = math.tanh %143 : vector<2x32xf32>
    %145 = arith.mulf %140, %144 : vector<2x32xf32>
    %c12_39 = arith.constant 12 : index
    %c0_40 = arith.constant 0 : index
    %146 = vector.load %arg10[%c12_39, %c0_40] : memref<16x32xf32, #tpu.memory_space<vmem>>, vector<2x32xf32>
    tpu.vector_store %arg10[%c12_39, %c0_40], %145 {strides = array<i32>} : memref<16x32xf32, #tpu.memory_space<vmem>>, vector<2x32xf32>,
    %c14 = arith.constant 14 : index
    %c0_41 = arith.constant 0 : index
    %147 = vector.load %arg1[%c14, %c0_41] : memref<16x128xf32, #tpu.memory_space<vmem>>, vector<2x128xf32>
    %148 = arith.truncf %145 : vector<2x32xf32> to vector<2x32xbf16>
    %cst_42 = arith.constant dense<0.000000e+00> : vector<2x128xf32>
    %149 = tpu.matmul %148, %16, %cst_42 {dimension_numbers = #tpu.dot_dimension_numbers<[1], [0], [0], [1], [0, 0, 1, 1], [], []>} : vector<2x32xbf16>, vector<32x128xbf16>, vector<2x128xf32> -> vector<2x128xf32>
    %150 = arith.addf %147, %149 : vector<2x128xf32>
    %151 = arith.mulf %11, %150 : vector<2x128xf32>
    %152 = math.tanh %151 : vector<2x128xf32>
    %153 = arith.mulf %11, %152 : vector<2x128xf32>
    %154 = arith.addf %153, %14 : vector<2x128xf32>
    %155 = vector.extract_strided_slice %154 {offsets = [0, 0], sizes = [2, 32], strides = [1, 1]} : vector<2x128xf32> to vector<2x32xf32>
    %156 = vector.extract_strided_slice %154 {offsets = [0, 32], sizes = [2, 32], strides = [1, 1]} : vector<2x128xf32> to vector<2x32xf32>
    %157 = vector.extract_strided_slice %154 {offsets = [0, 64], sizes = [2, 32], strides = [1, 1]} : vector<2x128xf32> to vector<2x32xf32>
    %158 = vector.extract_strided_slice %154 {offsets = [0, 96], sizes = [2, 32], strides = [1, 1]} : vector<2x128xf32> to vector<2x32xf32>
    %159 = arith.mulf %156, %143 : vector<2x32xf32>
    %160 = arith.mulf %155, %157 : vector<2x32xf32>
    %161 = arith.addf %159, %160 : vector<2x32xf32>
    %162 = math.tanh %161 : vector<2x32xf32>
    %163 = arith.mulf %158, %162 : vector<2x32xf32>
    %c14_43 = arith.constant 14 : index
    %c0_44 = arith.constant 0 : index
    %164 = vector.load %arg10[%c14_43, %c0_44] : memref<16x32xf32, #tpu.memory_space<vmem>>, vector<2x32xf32>
    tpu.vector_store %arg10[%c14_43, %c0_44], %163 {strides = array<i32>} : memref<16x32xf32, #tpu.memory_space<vmem>>, vector<2x32xf32>,
    %c0_45 = arith.constant 0 : index
    %c0_46 = arith.constant 0 : index
    %c0_47 = arith.constant 0 : index
    %165 = vector.load %arg8[%c0_45, %c0_46, %c0_47] : memref<2x2x32xf32, #tpu.memory_space<vmem>>, vector<1x2x32xf32>
    %166 = vector.shape_cast %165 : vector<1x2x32xf32> to vector<2x32xf32>
    %167 = vector.shape_cast %163 : vector<2x32xf32> to vector<1x2x32xf32>
    tpu.vector_store %arg8[%c0_45, %c0_46, %c0_47], %167 {strides = array<i32>} : memref<2x2x32xf32, #tpu.memory_space<vmem>>, vector<1x2x32xf32>,
    %c0_48 = arith.constant 0 : index
    %c0_49 = arith.constant 0 : index
    %c0_50 = arith.constant 0 : index
    %168 = vector.load %arg9[%c0_48, %c0_49, %c0_50] : memref<2x2x32xf32, #tpu.memory_space<vmem>>, vector<1x2x32xf32>
    %169 = vector.shape_cast %168 : vector<1x2x32xf32> to vector<2x32xf32>
    %170 = vector.shape_cast %161 : vector<2x32xf32> to vector<1x2x32xf32>
    tpu.vector_store %arg9[%c0_48, %c0_49, %c0_50], %170 {strides = array<i32>} : memref<2x2x32xf32, #tpu.memory_space<vmem>>, vector<1x2x32xf32>,
    %c0_51 = arith.constant 0 : index
    %c0_52 = arith.constant 0 : index
    %171 = vector.load %arg10[%c0_51, %c0_52] : memref<16x32xf32, #tpu.memory_space<vmem>>, vector<16x32xf32>
    %172 = arith.truncf %171 : vector<16x32xf32> to vector<16x32xbf16>
    %c0_53 = arith.constant 0 : index
    %c0_54 = arith.constant 0 : index
    %c0_55 = arith.constant 0 : index
    %173 = vector.load %arg3[%c0_53, %c0_54, %c0_55] : memref<1x32x128xbf16, #tpu.memory_space<vmem>>, vector<1x32x128xbf16>
    %174 = vector.shape_cast %173 : vector<1x32x128xbf16> to vector<32x128xbf16>
    %cst_56 = arith.constant dense<0.000000e+00> : vector<16x128xf32>
    %175 = tpu.matmul %172, %174, %cst_56 {dimension_numbers = #tpu.dot_dimension_numbers<[1], [0], [0], [1], [0, 0, 1, 1], [], []>} : vector<16x32xbf16>, vector<32x128xbf16>, vector<16x128xf32> -> vector<16x128xf32>
    %c0_57 = arith.constant 0 : index
    %c0_58 = arith.constant 0 : index
    %c0_59 = arith.constant 0 : index
    %176 = vector.load %arg4[%c0_57, %c0_58, %c0_59] : memref<1x1x128xf32, #tpu.memory_space<vmem>>, vector<1x1x128xf32>
    %177 = vector.shape_cast %176 : vector<1x1x128xf32> to vector<1x128xf32>
    %178 = vector.broadcast %177 : vector<1x128xf32> to vector<16x128xf32>
    %179 = arith.addf %175, %178 : vector<16x128xf32>
    %c1 = arith.constant 1 : index
    %c0_60 = arith.constant 0 : index
    %c0_61 = arith.constant 0 : index
    %180 = vector.load %arg2[%c1, %c0_60, %c0_61] : memref<2x32x128xbf16, #tpu.memory_space<vmem>>, vector<1x32x128xbf16>
    %181 = vector.shape_cast %180 : vector<1x32x128xbf16> to vector<32x128xbf16>
    %c1_62 = arith.constant 1 : index
    %c0_63 = arith.constant 0 : index
    %c0_64 = arith.constant 0 : index
    %182 = vector.load %arg8[%c1_62, %c0_63, %c0_64] : memref<2x2x32xf32, #tpu.memory_space<vmem>>, vector<1x2x32xf32>
    %183 = vector.shape_cast %182 : vector<1x2x32xf32> to vector<2x32xf32>
    %c1_65 = arith.constant 1 : index
    %c0_66 = arith.constant 0 : index
    %c0_67 = arith.constant 0 : index
    %184 = vector.load %arg9[%c1_65, %c0_66, %c0_67] : memref<2x2x32xf32, #tpu.memory_space<vmem>>, vector<1x2x32xf32>
    %185 = vector.shape_cast %184 : vector<1x2x32xf32> to vector<2x32xf32>
    %186 = vector.extract_strided_slice %179 {offsets = [0, 0], sizes = [2, 128], strides = [1, 1]} : vector<16x128xf32> to vector<2x128xf32>
    %187 = arith.truncf %183 : vector<2x32xf32> to vector<2x32xbf16>
    %cst_68 = arith.constant dense<0.000000e+00> : vector<2x128xf32>
    %188 = tpu.matmul %187, %181, %cst_68 {dimension_numbers = #tpu.dot_dimension_numbers<[1], [0], [0], [1], [0, 0, 1, 1], [], []>} : vector<2x32xbf16>, vector<32x128xbf16>, vector<2x128xf32> -> vector<2x128xf32>
    %189 = arith.addf %186, %188 : vector<2x128xf32>
    %190 = arith.mulf %11, %189 : vector<2x128xf32>
    %191 = math.tanh %190 : vector<2x128xf32>
    %192 = arith.mulf %11, %191 : vector<2x128xf32>
    %193 = arith.addf %192, %14 : vector<2x128xf32>
    %194 = vector.extract_strided_slice %193 {offsets = [0, 0], sizes = [2, 32], strides = [1, 1]} : vector<2x128xf32> to vector<2x32xf32>
    %195 = vector.extract_strided_slice %193 {offsets = [0, 32], sizes = [2, 32], strides = [1, 1]} : vector<2x128xf32> to vector<2x32xf32>
    %196 = vector.extract_strided_slice %193 {offsets = [0, 64], sizes = [2, 32], strides = [1, 1]} : vector<2x128xf32> to vector<2x32xf32>
    %197 = vector.extract_strided_slice %193 {offsets = [0, 96], sizes = [2, 32], strides = [1, 1]} : vector<2x128xf32> to vector<2x32xf32>
    %198 = arith.mulf %195, %185 : vector<2x32xf32>
    %199 = arith.mulf %194, %196 : vector<2x32xf32>
    %200 = arith.addf %198, %199 : vector<2x32xf32>
    %201 = math.tanh %200 : vector<2x32xf32>
    %202 = arith.mulf %197, %201 : vector<2x32xf32>
    %203 = vector.extract_strided_slice %179 {offsets = [2, 0], sizes = [2, 128], strides = [1, 1]} : vector<16x128xf32> to vector<2x128xf32>
    %204 = arith.truncf %202 : vector<2x32xf32> to vector<2x32xbf16>
    %cst_69 = arith.constant dense<0.000000e+00> : vector<2x128xf32>
    %205 = tpu.matmul %204, %181, %cst_69 {dimension_numbers = #tpu.dot_dimension_numbers<[1], [0], [0], [1], [0, 0, 1, 1], [], []>} : vector<2x32xbf16>, vector<32x128xbf16>, vector<2x128xf32> -> vector<2x128xf32>
    %206 = arith.addf %203, %205 : vector<2x128xf32>
    %207 = arith.mulf %11, %206 : vector<2x128xf32>
    %208 = math.tanh %207 : vector<2x128xf32>
    %209 = arith.mulf %11, %208 : vector<2x128xf32>
    %210 = arith.addf %209, %14 : vector<2x128xf32>
    %211 = vector.extract_strided_slice %210 {offsets = [0, 0], sizes = [2, 32], strides = [1, 1]} : vector<2x128xf32> to vector<2x32xf32>
    %212 = vector.extract_strided_slice %210 {offsets = [0, 32], sizes = [2, 32], strides = [1, 1]} : vector<2x128xf32> to vector<2x32xf32>
    %213 = vector.extract_strided_slice %210 {offsets = [0, 64], sizes = [2, 32], strides = [1, 1]} : vector<2x128xf32> to vector<2x32xf32>
    %214 = vector.extract_strided_slice %210 {offsets = [0, 96], sizes = [2, 32], strides = [1, 1]} : vector<2x128xf32> to vector<2x32xf32>
    %215 = arith.mulf %212, %200 : vector<2x32xf32>
    %216 = arith.mulf %211, %213 : vector<2x32xf32>
    %217 = arith.addf %215, %216 : vector<2x32xf32>
    %218 = math.tanh %217 : vector<2x32xf32>
    %219 = arith.mulf %214, %218 : vector<2x32xf32>
    %220 = vector.extract_strided_slice %179 {offsets = [4, 0], sizes = [2, 128], strides = [1, 1]} : vector<16x128xf32> to vector<2x128xf32>
    %221 = arith.truncf %219 : vector<2x32xf32> to vector<2x32xbf16>
    %cst_70 = arith.constant dense<0.000000e+00> : vector<2x128xf32>
    %222 = tpu.matmul %221, %181, %cst_70 {dimension_numbers = #tpu.dot_dimension_numbers<[1], [0], [0], [1], [0, 0, 1, 1], [], []>} : vector<2x32xbf16>, vector<32x128xbf16>, vector<2x128xf32> -> vector<2x128xf32>
    %223 = arith.addf %220, %222 : vector<2x128xf32>
    %224 = arith.mulf %11, %223 : vector<2x128xf32>
    %225 = math.tanh %224 : vector<2x128xf32>
    %226 = arith.mulf %11, %225 : vector<2x128xf32>
    %227 = arith.addf %226, %14 : vector<2x128xf32>
    %228 = vector.extract_strided_slice %227 {offsets = [0, 0], sizes = [2, 32], strides = [1, 1]} : vector<2x128xf32> to vector<2x32xf32>
    %229 = vector.extract_strided_slice %227 {offsets = [0, 32], sizes = [2, 32], strides = [1, 1]} : vector<2x128xf32> to vector<2x32xf32>
    %230 = vector.extract_strided_slice %227 {offsets = [0, 64], sizes = [2, 32], strides = [1, 1]} : vector<2x128xf32> to vector<2x32xf32>
    %231 = vector.extract_strided_slice %227 {offsets = [0, 96], sizes = [2, 32], strides = [1, 1]} : vector<2x128xf32> to vector<2x32xf32>
    %232 = arith.mulf %229, %217 : vector<2x32xf32>
    %233 = arith.mulf %228, %230 : vector<2x32xf32>
    %234 = arith.addf %232, %233 : vector<2x32xf32>
    %235 = math.tanh %234 : vector<2x32xf32>
    %236 = arith.mulf %231, %235 : vector<2x32xf32>
    %237 = vector.extract_strided_slice %179 {offsets = [6, 0], sizes = [2, 128], strides = [1, 1]} : vector<16x128xf32> to vector<2x128xf32>
    %238 = arith.truncf %236 : vector<2x32xf32> to vector<2x32xbf16>
    %cst_71 = arith.constant dense<0.000000e+00> : vector<2x128xf32>
    %239 = tpu.matmul %238, %181, %cst_71 {dimension_numbers = #tpu.dot_dimension_numbers<[1], [0], [0], [1], [0, 0, 1, 1], [], []>} : vector<2x32xbf16>, vector<32x128xbf16>, vector<2x128xf32> -> vector<2x128xf32>
    %240 = arith.addf %237, %239 : vector<2x128xf32>
    %241 = arith.mulf %11, %240 : vector<2x128xf32>
    %242 = math.tanh %241 : vector<2x128xf32>
    %243 = arith.mulf %11, %242 : vector<2x128xf32>
    %244 = arith.addf %243, %14 : vector<2x128xf32>
    %245 = vector.extract_strided_slice %244 {offsets = [0, 0], sizes = [2, 32], strides = [1, 1]} : vector<2x128xf32> to vector<2x32xf32>
    %246 = vector.extract_strided_slice %244 {offsets = [0, 32], sizes = [2, 32], strides = [1, 1]} : vector<2x128xf32> to vector<2x32xf32>
    %247 = vector.extract_strided_slice %244 {offsets = [0, 64], sizes = [2, 32], strides = [1, 1]} : vector<2x128xf32> to vector<2x32xf32>
    %248 = vector.extract_strided_slice %244 {offsets = [0, 96], sizes = [2, 32], strides = [1, 1]} : vector<2x128xf32> to vector<2x32xf32>
    %249 = arith.mulf %246, %234 : vector<2x32xf32>
    %250 = arith.mulf %245, %247 : vector<2x32xf32>
    %251 = arith.addf %249, %250 : vector<2x32xf32>
    %252 = math.tanh %251 : vector<2x32xf32>
    %253 = arith.mulf %248, %252 : vector<2x32xf32>
    %254 = vector.extract_strided_slice %179 {offsets = [8, 0], sizes = [2, 128], strides = [1, 1]} : vector<16x128xf32> to vector<2x128xf32>
    %255 = arith.truncf %253 : vector<2x32xf32> to vector<2x32xbf16>
    %cst_72 = arith.constant dense<0.000000e+00> : vector<2x128xf32>
    %256 = tpu.matmul %255, %181, %cst_72 {dimension_numbers = #tpu.dot_dimension_numbers<[1], [0], [0], [1], [0, 0, 1, 1], [], []>} : vector<2x32xbf16>, vector<32x128xbf16>, vector<2x128xf32> -> vector<2x128xf32>
    %257 = arith.addf %254, %256 : vector<2x128xf32>
    %258 = arith.mulf %11, %257 : vector<2x128xf32>
    %259 = math.tanh %258 : vector<2x128xf32>
    %260 = arith.mulf %11, %259 : vector<2x128xf32>
    %261 = arith.addf %260, %14 : vector<2x128xf32>
    %262 = vector.extract_strided_slice %261 {offsets = [0, 0], sizes = [2, 32], strides = [1, 1]} : vector<2x128xf32> to vector<2x32xf32>
    %263 = vector.extract_strided_slice %261 {offsets = [0, 32], sizes = [2, 32], strides = [1, 1]} : vector<2x128xf32> to vector<2x32xf32>
    %264 = vector.extract_strided_slice %261 {offsets = [0, 64], sizes = [2, 32], strides = [1, 1]} : vector<2x128xf32> to vector<2x32xf32>
    %265 = vector.extract_strided_slice %261 {offsets = [0, 96], sizes = [2, 32], strides = [1, 1]} : vector<2x128xf32> to vector<2x32xf32>
    %266 = arith.mulf %263, %251 : vector<2x32xf32>
    %267 = arith.mulf %262, %264 : vector<2x32xf32>
    %268 = arith.addf %266, %267 : vector<2x32xf32>
    %269 = math.tanh %268 : vector<2x32xf32>
    %270 = arith.mulf %265, %269 : vector<2x32xf32>
    %271 = vector.extract_strided_slice %179 {offsets = [10, 0], sizes = [2, 128], strides = [1, 1]} : vector<16x128xf32> to vector<2x128xf32>
    %272 = arith.truncf %270 : vector<2x32xf32> to vector<2x32xbf16>
    %cst_73 = arith.constant dense<0.000000e+00> : vector<2x128xf32>
    %273 = tpu.matmul %272, %181, %cst_73 {dimension_numbers = #tpu.dot_dimension_numbers<[1], [0], [0], [1], [0, 0, 1, 1], [], []>} : vector<2x32xbf16>, vector<32x128xbf16>, vector<2x128xf32> -> vector<2x128xf32>
    %274 = arith.addf %271, %273 : vector<2x128xf32>
    %275 = arith.mulf %11, %274 : vector<2x128xf32>
    %276 = math.tanh %275 : vector<2x128xf32>
    %277 = arith.mulf %11, %276 : vector<2x128xf32>
    %278 = arith.addf %277, %14 : vector<2x128xf32>
    %279 = vector.extract_strided_slice %278 {offsets = [0, 0], sizes = [2, 32], strides = [1, 1]} : vector<2x128xf32> to vector<2x32xf32>
    %280 = vector.extract_strided_slice %278 {offsets = [0, 32], sizes = [2, 32], strides = [1, 1]} : vector<2x128xf32> to vector<2x32xf32>
    %281 = vector.extract_strided_slice %278 {offsets = [0, 64], sizes = [2, 32], strides = [1, 1]} : vector<2x128xf32> to vector<2x32xf32>
    %282 = vector.extract_strided_slice %278 {offsets = [0, 96], sizes = [2, 32], strides = [1, 1]} : vector<2x128xf32> to vector<2x32xf32>
    %283 = arith.mulf %280, %268 : vector<2x32xf32>
    %284 = arith.mulf %279, %281 : vector<2x32xf32>
    %285 = arith.addf %283, %284 : vector<2x32xf32>
    %286 = math.tanh %285 : vector<2x32xf32>
    %287 = arith.mulf %282, %286 : vector<2x32xf32>
    %288 = vector.extract_strided_slice %179 {offsets = [12, 0], sizes = [2, 128], strides = [1, 1]} : vector<16x128xf32> to vector<2x128xf32>
    %289 = arith.truncf %287 : vector<2x32xf32> to vector<2x32xbf16>
    %cst_74 = arith.constant dense<0.000000e+00> : vector<2x128xf32>
    %290 = tpu.matmul %289, %181, %cst_74 {dimension_numbers = #tpu.dot_dimension_numbers<[1], [0], [0], [1], [0, 0, 1, 1], [], []>} : vector<2x32xbf16>, vector<32x128xbf16>, vector<2x128xf32> -> vector<2x128xf32>
    %291 = arith.addf %288, %290 : vector<2x128xf32>
    %292 = arith.mulf %11, %291 : vector<2x128xf32>
    %293 = math.tanh %292 : vector<2x128xf32>
    %294 = arith.mulf %11, %293 : vector<2x128xf32>
    %295 = arith.addf %294, %14 : vector<2x128xf32>
    %296 = vector.extract_strided_slice %295 {offsets = [0, 0], sizes = [2, 32], strides = [1, 1]} : vector<2x128xf32> to vector<2x32xf32>
    %297 = vector.extract_strided_slice %295 {offsets = [0, 32], sizes = [2, 32], strides = [1, 1]} : vector<2x128xf32> to vector<2x32xf32>
    %298 = vector.extract_strided_slice %295 {offsets = [0, 64], sizes = [2, 32], strides = [1, 1]} : vector<2x128xf32> to vector<2x32xf32>
    %299 = vector.extract_strided_slice %295 {offsets = [0, 96], sizes = [2, 32], strides = [1, 1]} : vector<2x128xf32> to vector<2x32xf32>
    %300 = arith.mulf %297, %285 : vector<2x32xf32>
    %301 = arith.mulf %296, %298 : vector<2x32xf32>
    %302 = arith.addf %300, %301 : vector<2x32xf32>
    %303 = math.tanh %302 : vector<2x32xf32>
    %304 = arith.mulf %299, %303 : vector<2x32xf32>
    %305 = vector.extract_strided_slice %179 {offsets = [14, 0], sizes = [2, 128], strides = [1, 1]} : vector<16x128xf32> to vector<2x128xf32>
    %306 = arith.truncf %304 : vector<2x32xf32> to vector<2x32xbf16>
    %cst_75 = arith.constant dense<0.000000e+00> : vector<2x128xf32>
    %307 = tpu.matmul %306, %181, %cst_75 {dimension_numbers = #tpu.dot_dimension_numbers<[1], [0], [0], [1], [0, 0, 1, 1], [], []>} : vector<2x32xbf16>, vector<32x128xbf16>, vector<2x128xf32> -> vector<2x128xf32>
    %308 = arith.addf %305, %307 : vector<2x128xf32>
    %309 = arith.mulf %11, %308 : vector<2x128xf32>
    %310 = math.tanh %309 : vector<2x128xf32>
    %311 = arith.mulf %11, %310 : vector<2x128xf32>
    %312 = arith.addf %311, %14 : vector<2x128xf32>
    %313 = vector.extract_strided_slice %312 {offsets = [0, 0], sizes = [2, 32], strides = [1, 1]} : vector<2x128xf32> to vector<2x32xf32>
    %314 = vector.extract_strided_slice %312 {offsets = [0, 32], sizes = [2, 32], strides = [1, 1]} : vector<2x128xf32> to vector<2x32xf32>
    %315 = vector.extract_strided_slice %312 {offsets = [0, 64], sizes = [2, 32], strides = [1, 1]} : vector<2x128xf32> to vector<2x32xf32>
    %316 = vector.extract_strided_slice %312 {offsets = [0, 96], sizes = [2, 32], strides = [1, 1]} : vector<2x128xf32> to vector<2x32xf32>
    %317 = arith.mulf %314, %302 : vector<2x32xf32>
    %318 = arith.mulf %313, %315 : vector<2x32xf32>
    %319 = arith.addf %317, %318 : vector<2x32xf32>
    %320 = math.tanh %319 : vector<2x32xf32>
    %321 = arith.mulf %316, %320 : vector<2x32xf32>
    %c1_76 = arith.constant 1 : index
    %c0_77 = arith.constant 0 : index
    %c0_78 = arith.constant 0 : index
    %322 = vector.load %arg8[%c1_76, %c0_77, %c0_78] : memref<2x2x32xf32, #tpu.memory_space<vmem>>, vector<1x2x32xf32>
    %323 = vector.shape_cast %322 : vector<1x2x32xf32> to vector<2x32xf32>
    %324 = vector.shape_cast %321 : vector<2x32xf32> to vector<1x2x32xf32>
    tpu.vector_store %arg8[%c1_76, %c0_77, %c0_78], %324 {strides = array<i32>} : memref<2x2x32xf32, #tpu.memory_space<vmem>>, vector<1x2x32xf32>,
    %c1_79 = arith.constant 1 : index
    %c0_80 = arith.constant 0 : index
    %c0_81 = arith.constant 0 : index
    %325 = vector.load %arg9[%c1_79, %c0_80, %c0_81] : memref<2x2x32xf32, #tpu.memory_space<vmem>>, vector<1x2x32xf32>
    %326 = vector.shape_cast %325 : vector<1x2x32xf32> to vector<2x32xf32>
    %327 = vector.shape_cast %319 : vector<2x32xf32> to vector<1x2x32xf32>
    tpu.vector_store %arg9[%c1_79, %c0_80, %c0_81], %327 {strides = array<i32>} : memref<2x2x32xf32, #tpu.memory_space<vmem>>, vector<1x2x32xf32>,
    %c0_i32_82 = arith.constant 0 : i32
    %328 = arith.cmpi eq, %arg0, %c0_i32_82 : i32
    %329 = arith.extui %328 : i1 to i32
    %c0_i32_83 = arith.constant 0 : i32
    %330 = arith.cmpi ne, %329, %c0_i32_83 : i32
    scf.if %330 {
      %c0_84 = arith.constant 0 : index
      %c0_85 = arith.constant 0 : index
      %331 = vector.load %arg5[%c0_84, %c0_85] : memref<32x4xbf16, #tpu.memory_space<vmem>>, vector<32x4xbf16>
      %332 = arith.truncf %321 : vector<2x32xf32> to vector<2x32xbf16>
      %cst_86 = arith.constant dense<0.000000e+00> : vector<2x4xf32>
      %333 = tpu.matmul %332, %331, %cst_86 {dimension_numbers = #tpu.dot_dimension_numbers<[1], [0], [0], [1], [0, 0, 1, 1], [], []>} : vector<2x32xbf16>, vector<32x4xbf16>, vector<2x4xf32> -> vector<2x4xf32>
      %c0_87 = arith.constant 0 : index
      %c0_88 = arith.constant 0 : index
      %334 = vector.load %arg6[%c0_87, %c0_88] : memref<1x4xf32, #tpu.memory_space<vmem>>, vector<1x4xf32>
      %335 = vector.broadcast %334 : vector<1x4xf32> to vector<2x4xf32>
      %336 = arith.addf %333, %335 : vector<2x4xf32>
      %c0_89 = arith.constant 0 : index
      %c0_90 = arith.constant 0 : index
      %337 = vector.load %arg7[%c0_89, %c0_90] : memref<2x4xf32, #tpu.memory_space<vmem>>, vector<2x4xf32>
      tpu.vector_store %arg7[%c0_89, %c0_90], %336 {strides = array<i32>} : memref<2x4xf32, #tpu.memory_space<vmem>>, vector<2x4xf32>,
    } else {
    }
    return
  }
  func.func @transform_0(%arg0: i32) -> (i32, i32) {
    %c0_i32 = arith.constant 0 : i32
    %c0_i32_0 = arith.constant 0 : i32
    return %arg0, %c0_i32 : i32, i32
  }
  func.func @transform_1(%arg0: i32) -> (i32, i32, i32) {
    %c0_i32 = arith.constant 0 : i32
    %c0_i32_0 = arith.constant 0 : i32
    %c0_i32_1 = arith.constant 0 : i32
    %c0_i32_2 = arith.constant 0 : i32
    return %c0_i32, %c0_i32_0, %c0_i32_1 : i32, i32, i32
  }
  func.func @transform_2(%arg0: i32) -> (i32, i32, i32) {
    %c0_i32 = arith.constant 0 : i32
    %c0_i32_0 = arith.constant 0 : i32
    %c0_i32_1 = arith.constant 0 : i32
    %c0_i32_2 = arith.constant 0 : i32
    return %c0_i32, %c0_i32_0, %c0_i32_1 : i32, i32, i32
  }
  func.func @transform_3(%arg0: i32) -> (i32, i32, i32) {
    %c0_i32 = arith.constant 0 : i32
    %c0_i32_0 = arith.constant 0 : i32
    %c0_i32_1 = arith.constant 0 : i32
    %c0_i32_2 = arith.constant 0 : i32
    return %c0_i32, %c0_i32_0, %c0_i32_1 : i32, i32, i32
  }
  func.func @transform_4(%arg0: i32) -> (i32, i32) {
    %c0_i32 = arith.constant 0 : i32
    %c0_i32_0 = arith.constant 0 : i32
    %c0_i32_1 = arith.constant 0 : i32
    return %c0_i32, %c0_i32_0 : i32, i32
  }
  func.func @transform_5(%arg0: i32) -> (i32, i32) {
    %c0_i32 = arith.constant 0 : i32
    %c0_i32_0 = arith.constant 0 : i32
    %c0_i32_1 = arith.constant 0 : i32
    return %c0_i32, %c0_i32_0 : i32, i32
  }
  func.func @transform_6(%arg0: i32) -> (i32, i32) {
    %c0_i32 = arith.constant 0 : i32
    %c0_i32_0 = arith.constant 0 : i32
    %c0_i32_1 = arith.constant 0 : i32
    return %c0_i32, %c0_i32_0 : i32, i32
  }
}

</mosaic_0001>

<bundles_post_ra>
// kernel: rnn_forward.1
= control target key start
LH: loop header
LB: loop body
LE: loop exit
PB: predicated region body
PF: predicated region fallthrough
CT: control target
= control target key end

     0   :  { %vm29_vm0 = vcmask 254976   ;;  %v1127_v1 = vmov 0.0   ;;  %s1433_s0 = inlined_call_operand.vmem [shape: f32[16,128], index: 0, kind: input, shape index: {}]   ;;  %s1434_s1 = inlined_call_operand.vmem [shape: bf16[2,32,128], index: 1, kind: input, shape index: {}]   ;;  %s1435_s2 = inlined_call_operand.vmem [shape: bf16[1,32,128], index: 2, kind: input, shape index: {}]   ;;  %s1436_s3 = inlined_call_operand.vmem [shape: f32[1,1,128], index: 3, kind: input, shape index: {}]   ;;  %s1437_s4 = inlined_call_operand.vmem [shape: bf16[32,4], index: 4, kind: input, shape index: {}]   ;;  %s1438_s5 = inlined_call_operand.vmem [shape: f32[1,4], index: 5, kind: input, shape index: {}]   ;;  %s1439_s6 = inlined_call_operand.hbm [shape: f32[2,4], index: 6, kind: output, shape index: {}]  }
   0x1   :  { %v1022_v0 = vld [vmem:[%s1434_s1 + $0x8] sm:$0xff]  ;;  %30 = vst.msk [vmem:[#allocation2] sm:$0x3] %vm29_vm0, %v1127_v1  ;;  %v1021_v2 = vld [vmem:[%s1434_s1] sm:$0xff] }
   0x2   :  { %71 = vmatpush.bf16.msra.mxu0 %v1022_v0  ;;  %31 = vst.msk [vmem:[#allocation2 + $0x2] sm:$0x3] %vm29_vm0, %v1127_v1  ;;  %124 = vmatpush.bf16.msra.mxu1 %v1022_v0 }
   0x3   :  { %32 = vst.msk [vmem:[#allocation3] sm:$0x3] %vm29_vm0, %v1127_v1  ;;  %172 = vmatpush.bf16.msra.mxu2 %v1022_v0  ;;  %220 = vmatpush.bf16.msra.mxu3 %v1022_v0 }
   0x4   :  { %11 = vsyncpa [#allocation6], 0  ;;  %33 = vst.msk [vmem:[#allocation3 + $0x2] sm:$0x3] %vm29_vm0, %v1127_v1  ;;  %vm61_vm1 = vcmask 261120   ;;  %v34_v5 = vlaneseq  ;;  %v1128_v8 = vmov 0.5  }
   0x5   :  { %v47_v7 = vld [vmem:[%s1433_s0] sm:$0x3]  ;;  %s1129_s27 = smov 64   ;;  %s1130_s28 = smov 32   ;;  %v110_v30 = vld [vmem:[%s1433_s0 + $0x2] sm:$0x3] }
   0x6   :  { %72 = vmatpush.bf16.msra.mxu0 %v1021_v2  ;;  %125 = vmatpush.bf16.msra.mxu1 %v1021_v2  ;;  %v35_v6 = vand.u32 127, %v34_v5  ;;  %v158_v48 = vld [vmem:[%s1433_s0 + $0x4] sm:$0x3]  ;;  %vm898_vm5 = vcmask 261126   ;;  %s1132_s8 = smov [#allocation5]   ;;  %s958_s12 = sshll.u32 %s1439_s6, 4  ;;  %s959_s12 = int_to_ptr.hbm [resolvable:$true] %s958_s12 }
   0x7   :  { %173 = vmatpush.bf16.msra.mxu2 %v1021_v2  ;;  %221 = vmatpush.bf16.msra.mxu3 %v1021_v2  ;;  %s956_s9 = sshll.u32 %s1132_s8, 4  ;;  %vm949_vm6 = vcmask 25600   ;;  %s957_s9 = int_to_ptr.vmem [resolvable:$true] %s956_s9 }
   0x8   :  { %v45_v3 = vld [vmem:[#allocation2] sm:$0x3]  ;;  %vm36_vm2 = vcmp.ge.s32.totalorder %v35_v6, 64  ;;  %vm37_vm3 = vcmp.lt.s32.totalorder %v35_v6, 96 }
   0x9   :  { %v48_v4 = vpack.c.bf16 %v45_v3, %v45_v3  ;;  %vm38_vm4 = vmand %vm36_vm2, %vm37_vm3 }
   0xa   :  { %268 = vmatpush.bf16.msrb.mxu0 %v1022_v0  ;;  %316 = vmatpush.bf16.msrb.mxu1 %v1022_v0  ;;  %v1182_v9 = vsel %vm38_vm4, 1.0, %v1128_v8  ;;  %v1185_v15 = vsel %vm38_vm4, 0.0, %v1128_v8  ;;  %v46_v18 = vld [vmem:[#allocation3] sm:$0x3] }
   0xb   :  { %364 = vmatpush.bf16.msrb.mxu2 %v1022_v0  ;;  %412 = vmatpush.bf16.msrb.mxu3 %v1022_v0 }
   0xc   :  { %975 = vmatmul.msk.bf16.vlgmr.msra.gmra.mxu0 %vm61_vm1, %v48_v4 }
   0xe   :  { %269 = vmatpush.bf16.msrb.mxu0 %v1021_v2  ;;  %317 = vmatpush.bf16.msrb.mxu1 %v1021_v2 }
   0xf   :  { %365 = vmatpush.bf16.msrb.mxu2 %v1021_v2  ;;  %413 = vmatpush.bf16.msrb.mxu3 %v1021_v2  ;;  %v206_v2 = vld [vmem:[%s1433_s0 + $0x6] sm:$0x3] }
  0x89   :  { %v74_v10 = vpop.f32.mrf.mxu0 }
  0x8a   :  { %v78_v11 = vadd.f32 %v74_v10, %v47_v7 }
  0x8c   :  { %v79_v12 = vmul.f32 %v78_v11, %v1182_v9 }
  0x8e   :  { %1037 = vtanh.f32 %v79_v12 }
  0x91   :  { %v76_v13 = vpop.f32.mrf.mxu0 }
  0x94   :  { %v1038_v14 = vpop.eup %1037 }
  0x95   :  { %v81_v16 = vmul.f32 %v1038_v14, %v1182_v9 }
  0x97   :  { %v82_v17 = vadd.f32 %v81_v16, %v1185_v15 }
  0x99   :  { %89 = vrot.lane.b32.xlu0 %v82_v17, %s1129_s27 }
  0xa1   :  { %84 = vrot.lane.b32.xlu0 %v46_v18, %s1130_s28 }
 0x10b   :  { %v90_v19 = vpop.permute.xlu0 %89 }
 0x10c   :  { %v92_v20 = vmul.f32 %v90_v19, %v82_v17 }
 0x10e   :  { %94 = vrot.lane.b32.xlu1 %v92_v20, %s1130_s28 }
 0x113   :  { %v85_v21 = vpop.permute.xlu0 %84 }
 0x114   :  { %v87_v22 = vmul.f32 %v85_v21, %v82_v17 }
 0x180   :  { %v95_v23 = vpop.permute.xlu1 %94 }
 0x181   :  { %v97_v24 = vadd.f32 %v95_v23, %v87_v22  ;;  %v254_v22 = vld [vmem:[%s1433_s0 + $0x8] sm:$0x3] }
 0x183   :  { %1039 = vtanh.f32 %v97_v24 }
 0x189   :  { %v1040_v25 = vpop.eup %1039 }
 0x18a   :  { %100 = vrot.lane.b32.xlu1 %v1040_v25, %s1129_s27 }
 0x1fc   :  { %v101_v26 = vpop.permute.xlu1 %100 }
 0x1fd   :  { %v1193_v27 = vmul.f32 %v101_v26, %v82_v17 }
 0x1ff   :  { %v111_v28 = vpack.c.bf16 %v1193_v27, %v1193_v27 }
 0x201   :  { %113 = vrot.lane.b32.xlu2 %v111_v28, %s1130_s28 }
 0x25b   :  { %v114_v29 = vpop.permute.xlu2 %113 }
 0x25c   :  { %976 = vmatmul.msk.bf16.vlgmr.msra.gmra.mxu1 %vm61_vm1, %v114_v29 }
 0x2d9   :  { %v127_v31 = vpop.f32.mrf.mxu1 }
 0x2da   :  { %v131_v32 = vadd.f32 %v127_v31, %v110_v30 }
 0x2dc   :  { %v132_v33 = vmul.f32 %v131_v32, %v1182_v9 }
 0x2de   :  { %1041 = vtanh.f32 %v132_v33 }
 0x2e1   :  { %v129_v34 = vpop.f32.mrf.mxu1 }
 0x2e4   :  { %v1042_v35 = vpop.eup %1041 }
 0x2e5   :  { %v134_v36 = vmul.f32 %v1042_v35, %v1182_v9 }
 0x2e7   :  { %v135_v37 = vadd.f32 %v134_v36, %v1185_v15 }
 0x2e9   :  { %138 = vrot.lane.b32.xlu2 %v135_v37, %s1129_s27  ;;  %v136_v40 = vmul.f32 %v135_v37, %v97_v24 }
 0x343   :  { %v139_v38 = vpop.permute.xlu2 %138 }
 0x344   :  { %v141_v39 = vmul.f32 %v139_v38, %v135_v37 }
 0x346   :  { %143 = vrot.lane.b32.xlu0 %v141_v39, %s1130_s28 }
 0x3b8   :  { %v144_v41 = vpop.permute.xlu0 %143 }
 0x3b9   :  { %v146_v42 = vadd.f32 %v144_v41, %v136_v40  ;;  %v302_v41 = vld [vmem:[%s1433_s0 + $0xa] sm:$0x3] }
 0x3bb   :  { %1043 = vtanh.f32 %v146_v42 }
 0x3c1   :  { %v1044_v43 = vpop.eup %1043 }
 0x3c2   :  { %149 = vrot.lane.b32.xlu1 %v1044_v43, %s1129_s27 }
 0x434   :  { %v150_v44 = vpop.permute.xlu1 %149 }
 0x435   :  { %v1208_v45 = vmul.f32 %v150_v44, %v135_v37 }
 0x437   :  { %v159_v46 = vpack.c.bf16 %v1208_v45, %v1208_v45 }
 0x439   :  { %161 = vrot.lane.b32.xlu2 %v159_v46, %s1130_s28 }
 0x493   :  { %v162_v47 = vpop.permute.xlu2 %161 }
 0x494   :  { %977 = vmatmul.msk.bf16.vlgmr.msra.gmra.mxu2 %vm61_vm1, %v162_v47 }
 0x517   :  { %v175_v49 = vpop.f32.mrf.mxu2 }
 0x518   :  { %v179_v50 = vadd.f32 %v175_v49, %v158_v48 }
 0x51a   :  { %v180_v51 = vmul.f32 %v179_v50, %v1182_v9 }
 0x51c   :  { %1045 = vtanh.f32 %v180_v51 }
 0x51f   :  { %v177_v52 = vpop.f32.mrf.mxu2 }
 0x522   :  { %v1046_v53 = vpop.eup %1045 }
 0x523   :  { %v182_v54 = vmul.f32 %v1046_v53, %v1182_v9 }
 0x525   :  { %v183_v55 = vadd.f32 %v182_v54, %v1185_v15 }
 0x527   :  { %186 = vrot.lane.b32.xlu0 %v183_v55, %s1129_s27  ;;  %v184_v58 = vmul.f32 %v183_v55, %v146_v42 }
 0x599   :  { %v187_v56 = vpop.permute.xlu0 %186 }
 0x59a   :  { %v189_v57 = vmul.f32 %v187_v56, %v183_v55 }
 0x59c   :  { %191 = vrot.lane.b32.xlu1 %v189_v57, %s1130_s28 }
 0x60e   :  { %v192_v59 = vpop.permute.xlu1 %191 }
 0x60f   :  { %v194_v60 = vadd.f32 %v192_v59, %v184_v58 }
 0x611   :  { %1047 = vtanh.f32 %v194_v60 }
 0x617   :  { %v1048_v61 = vpop.eup %1047 }
 0x618   :  { %197 = vrot.lane.b32.xlu2 %v1048_v61, %s1129_s27 }
 0x672   :  { %v198_v62 = vpop.permute.xlu2 %197 }
 0x673   :  { %v1223_v63 = vmul.f32 %v198_v62, %v183_v55 }
 0x675   :  { %v207_v0 = vpack.c.bf16 %v1223_v63, %v1223_v63 }
 0x677   :  { %209 = vrot.lane.b32.xlu0 %v207_v0, %s1130_s28 }
 0x6e9   :  { %v210_v1 = vpop.permute.xlu0 %209 }
 0x6ea   :  { %978 = vmatmul.msk.bf16.vlgmr.msra.gmra.mxu3 %vm61_vm1, %v210_v1 }
 0x76d   :  { %v223_v3 = vpop.f32.mrf.mxu3 }
 0x76e   :  { %v227_v4 = vadd.f32 %v223_v3, %v206_v2 }
 0x770   :  { %v228_v5 = vmul.f32 %v227_v4, %v1182_v9 }
 0x772   :  { %1049 = vtanh.f32 %v228_v5 }
 0x775   :  { %v225_v6 = vpop.f32.mrf.mxu3 }
 0x778   :  { %v1050_v7 = vpop.eup %1049 }
 0x779   :  { %v230_v8 = vmul.f32 %v1050_v7, %v1182_v9 }
 0x77b   :  { %v231_v10 = vadd.f32 %v230_v8, %v1185_v15 }
 0x77d   :  { %234 = vrot.lane.b32.xlu1 %v231_v10, %s1129_s27  ;;  %v232_v13 = vmul.f32 %v231_v10, %v194_v60  ;;  %v350_v60 = vld [vmem:[%s1433_s0 + $0xc] sm:$0x3] }
 0x7ef   :  { %v235_v11 = vpop.permute.xlu1 %234 }
 0x7f0   :  { %v237_v12 = vmul.f32 %v235_v11, %v231_v10 }
 0x7f2   :  { %239 = vrot.lane.b32.xlu2 %v237_v12, %s1130_s28 }
 0x84c   :  { %v240_v14 = vpop.permute.xlu2 %239 }
 0x84d   :  { %v242_v16 = vadd.f32 %v240_v14, %v232_v13 }
 0x84f   :  { %1051 = vtanh.f32 %v242_v16 }
 0x855   :  { %v1052_v17 = vpop.eup %1051 }
 0x856   :  { %245 = vrot.lane.b32.xlu0 %v1052_v17, %s1129_s27  ;;  %v398_v17 = vld [vmem:[%s1433_s0 + $0xe] sm:$0x3] }
 0x8c8   :  { %v246_v18 = vpop.permute.xlu0 %245 }
 0x8c9   :  { %v1238_v19 = vmul.f32 %v246_v18, %v231_v10 }
 0x8cb   :  { %v255_v20 = vpack.c.bf16 %v1238_v19, %v1238_v19 }
 0x8cd   :  { %257 = vrot.lane.b32.xlu1 %v255_v20, %s1130_s28 }
 0x93f   :  { %v258_v21 = vpop.permute.xlu1 %257 }
 0x940   :  { %979 = vmatmul.msk.bf16.vlgmr.msrb.gmra.mxu0 %vm61_vm1, %v258_v21 }
 0x9bd   :  { %v271_v23 = vpop.f32.mrf.mxu0 }
 0x9be   :  { %v275_v24 = vadd.f32 %v271_v23, %v254_v22 }
 0x9c0   :  { %v276_v25 = vmul.f32 %v275_v24, %v1182_v9 }
 0x9c2   :  { %1053 = vtanh.f32 %v276_v25 }
 0x9c5   :  { %v273_v26 = vpop.f32.mrf.mxu0 }
 0x9c8   :  { %v1054_v28 = vpop.eup %1053 }
 0x9c9   :  { %v278_v29 = vmul.f32 %v1054_v28, %v1182_v9 }
 0x9cb   :  { %v279_v30 = vadd.f32 %v278_v29, %v1185_v15 }
 0x9cd   :  { %282 = vrot.lane.b32.xlu2 %v279_v30, %s1129_s27  ;;  %v280_v33 = vmul.f32 %v279_v30, %v242_v16 }
 0xa27   :  { %v283_v31 = vpop.permute.xlu2 %282 }
 0xa28   :  { %v285_v32 = vmul.f32 %v283_v31, %v279_v30 }
 0xa2a   :  { %287 = vrot.lane.b32.xlu0 %v285_v32, %s1130_s28 }
 0xa9c   :  { %v288_v34 = vpop.permute.xlu0 %287 }
 0xa9d   :  { %v290_v35 = vadd.f32 %v288_v34, %v280_v33 }
 0xa9f   :  { %1055 = vtanh.f32 %v290_v35 }
 0xaa5   :  { %v1056_v36 = vpop.eup %1055 }
 0xaa6   :  { %293 = vrot.lane.b32.xlu1 %v1056_v36, %s1129_s27  ;;  %v1026_v36 = vld [vmem:[%s1434_s1 + $0x18] sm:$0xff] }
 0xaa7   :  { %523 = vmatpush.bf16.msra.mxu1 %v1026_v36  ;;  %569 = vmatpush.bf16.msra.mxu2 %v1026_v36 }
 0xaa8   :  { %618 = vmatpush.bf16.msra.mxu3 %v1026_v36 }
 0xb18   :  { %v294_v37 = vpop.permute.xlu1 %293 }
 0xb19   :  { %v1253_v38 = vmul.f32 %v294_v37, %v279_v30 }
 0xb1b   :  { %v303_v39 = vpack.c.bf16 %v1253_v38, %v1253_v38 }
 0xb1d   :  { %305 = vrot.lane.b32.xlu2 %v303_v39, %s1130_s28 }
 0xb77   :  { %v306_v40 = vpop.permute.xlu2 %305 }
 0xb78   :  { %980 = vmatmul.msk.bf16.vlgmr.msrb.gmra.mxu1 %vm61_vm1, %v306_v40  ;;  %v1025_v40 = vld [vmem:[%s1434_s1 + $0x10] sm:$0xff] }
 0xb79   :  { %524 = vmatpush.bf16.msra.mxu1 %v1025_v40  ;;  %570 = vmatpush.bf16.msra.mxu2 %v1025_v40 }
 0xb7a   :  { %619 = vmatpush.bf16.msra.mxu3 %v1025_v40 }
 0xb7d   :  { %716 = vmatpush.bf16.msrb.mxu1 %v1026_v36 }
 0xb81   :  { %717 = vmatpush.bf16.msrb.mxu1 %v1025_v40 }
 0xbf5   :  { %v319_v42 = vpop.f32.mrf.mxu1 }
 0xbf6   :  { %v323_v43 = vadd.f32 %v319_v42, %v302_v41  ;;  %v1023_v41 = vld [vmem:[%s1435_s2] sm:$0xff] }
 0xbf7   :  { %v498_v42 = vld [vmem:[#allocation2 + $0x2] sm:$0x3] }
 0xbf8   :  { %v324_v44 = vmul.f32 %v323_v43, %v1182_v9  ;;  %v501_v43 = vpack.c.bf16 %v498_v42, %v498_v42 }
 0xbfa   :  { %1057 = vtanh.f32 %v324_v44  ;;  %1004 = vmatmul.msk.bf16.vlgmr.msra.gmra.mxu1 %vm61_vm1, %v501_v43  ;;  %v500_v44 = vld [vmem:[#allocation3 + $0x2] sm:$0x3] }
 0xbfd   :  { %v321_v46 = vpop.f32.mrf.mxu1 }
 0xc00   :  { %v1058_v47 = vpop.eup %1057 }
 0xc01   :  { %v326_v48 = vmul.f32 %v1058_v47, %v1182_v9 }
 0xc03   :  { %v327_v49 = vadd.f32 %v326_v48, %v1185_v15 }
 0xc05   :  { %330 = vrot.lane.b32.xlu0 %v327_v49, %s1129_s27  ;;  %v328_v52 = vmul.f32 %v327_v49, %v290_v35  ;;  %v1024_v35 = vld [vmem:[%s1435_s2 + $0x8] sm:$0xff] }
 0xc06   :  { %484 = vmatpush.bf16.msra.mxu0 %v1024_v35 }
 0xc0a   :  { %485 = vmatpush.bf16.msra.mxu0 %v1023_v41 }
 0xc0e   :  { %667 = vmatpush.bf16.msrb.mxu0 %v1026_v36 }
 0xc12   :  { %668 = vmatpush.bf16.msrb.mxu0 %v1025_v40 }
 0xc77   :  { %v331_v50 = vpop.permute.xlu0 %330 }
 0xc78   :  { %v333_v51 = vmul.f32 %v331_v50, %v327_v49  ;;  %v526_v50 = vpop.f32.mrf.mxu1 }
 0xc7a   :  { %335 = vrot.lane.b32.xlu1 %v333_v51, %s1130_s28 }
 0xc80   :  { %v528_v51 = vpop.f32.mrf.mxu1 }
 0xcec   :  { %v336_v53 = vpop.permute.xlu1 %335 }
 0xced   :  { %v338_v54 = vadd.f32 %v336_v53, %v328_v52  ;;  %v1338_v52 = vld [vmem:[%s1436_s3] ss:$0 sm:$0xff]  ;;  %s1131_s3 = smov 96  }
 0xcef   :  { %1059 = vtanh.f32 %v338_v54 }
 0xcf5   :  { %v1060_v55 = vpop.eup %1059 }
 0xcf6   :  { %341 = vrot.lane.b32.xlu2 %v1060_v55, %s1129_s27 }
 0xd50   :  { %v342_v56 = vpop.permute.xlu2 %341 }
 0xd51   :  { %v1268_v57 = vmul.f32 %v342_v56, %v327_v49 }
 0xd53   :  { %v351_v58 = vpack.c.bf16 %v1268_v57, %v1268_v57 }
 0xd55   :  { %353 = vrot.lane.b32.xlu0 %v351_v58, %s1130_s28 }
 0xdc7   :  { %v354_v59 = vpop.permute.xlu0 %353 }
 0xdc8   :  { %981 = vmatmul.msk.bf16.vlgmr.msrb.gmra.mxu2 %vm61_vm1, %v354_v59 }
 0xdc9   :  { %761 = vmatpush.bf16.msrb.mxu2 %v1026_v36 }
 0xdcd   :  { %762 = vmatpush.bf16.msrb.mxu2 %v1025_v40 }
 0xe4b   :  { %v367_v61 = vpop.f32.mrf.mxu2 }
 0xe4c   :  { %v371_v62 = vadd.f32 %v367_v61, %v350_v60 }
 0xe4e   :  { %v372_v0 = vmul.f32 %v371_v62, %v1182_v9 }
 0xe50   :  { %1061 = vtanh.f32 %v372_v0 }
 0xe53   :  { %v369_v1 = vpop.f32.mrf.mxu2 }
 0xe56   :  { %v1062_v2 = vpop.eup %1061 }
 0xe57   :  { %v374_v3 = vmul.f32 %v1062_v2, %v1182_v9 }
 0xe59   :  { %v375_v4 = vadd.f32 %v374_v3, %v1185_v15 }
 0xe5b   :  { %378 = vrot.lane.b32.xlu1 %v375_v4, %s1129_s27  ;;  %v376_v7 = vmul.f32 %v375_v4, %v338_v54 }
 0xecd   :  { %v379_v5 = vpop.permute.xlu1 %378 }
 0xece   :  { %v381_v6 = vmul.f32 %v379_v5, %v375_v4 }
 0xed0   :  { %383 = vrot.lane.b32.xlu2 %v381_v6, %s1130_s28 }
 0xf2a   :  { %v384_v8 = vpop.permute.xlu2 %383 }
 0xf2b   :  { %v386_v10 = vadd.f32 %v384_v8, %v376_v7 }
 0xf2d   :  { %1063 = vtanh.f32 %v386_v10 }
 0xf33   :  { %v1064_v11 = vpop.eup %1063 }
 0xf34   :  { %389 = vrot.lane.b32.xlu0 %v1064_v11, %s1129_s27 }
 0xfa6   :  { %v390_v12 = vpop.permute.xlu0 %389 }
 0xfa7   :  { %v392_v13 = vmul.f32 %v390_v12, %v375_v4 }
 0xfa9   :  { %v399_v14 = vpack.c.bf16 %v392_v13, %v392_v13 }
 0xfab   :  { %401 = vrot.lane.b32.xlu1 %v399_v14, %s1130_s28 }
0x101d   :  { %v402_v16 = vpop.permute.xlu1 %401 }
0x101e   :  { %982 = vmatmul.msk.bf16.vlgmr.msrb.gmra.mxu3 %vm61_vm1, %v402_v16 }
0x101f   :  { %810 = vmatpush.bf16.msrb.mxu3 %v1026_v36 }
0x1023   :  { %811 = vmatpush.bf16.msrb.mxu3 %v1025_v40 }
0x10a1   :  { %v415_v18 = vpop.f32.mrf.mxu3 }
0x10a2   :  { %v419_v20 = vadd.f32 %v415_v18, %v398_v17 }
0x10a4   :  { %v420_v21 = vmul.f32 %v419_v20, %v1182_v9 }
0x10a6   :  { %1065 = vtanh.f32 %v420_v21 }
0x10a9   :  { %v417_v22 = vpop.f32.mrf.mxu3 }
0x10ac   :  { %v1066_v23 = vpop.eup %1065 }
0x10ad   :  { %v422_v24 = vmul.f32 %v1066_v23, %v1182_v9 }
0x10af   :  { %v423_v25 = vadd.f32 %v422_v24, %v1185_v15 }
0x10b1   :  { %426 = vrot.lane.b32.xlu2 %v423_v25, %s1129_s27 }
0x10b9   :  { %105 = vrot.lane.b32.xlu2 %v1193_v27, %s1130_s28 }
0x10c1   :  { %250 = vrot.lane.b32.xlu2 %v1238_v19, %s1130_s28  ;;  %v424_v19 = vmul.f32 %v423_v25, %v386_v10 }
0x10c9   :  { %394 = vrot.lane.b32.xlu2 %v392_v13, %s1130_s28 }
0x10d1   :  { %536 = vrot.lane.b32.xlu2 %v500_v44, %s1130_s28 }
0x110b   :  { %v427_v26 = vpop.permute.xlu2 %426 }
0x110c   :  { %v429_v28 = vmul.f32 %v427_v26, %v423_v25 }
0x110e   :  { %431 = vrot.lane.b32.xlu0 %v429_v28, %s1130_s28 }
0x1113   :  { %v106_v29 = vpop.permute.xlu2 %105 }
0x1114   :  { %109 = vst.msk [vmem:[#allocation4] sm:$0x3] %vm29_vm0, %v106_v29 }
0x1116   :  { %154 = vrot.lane.b32.xlu0 %v1208_v45, %s1130_s28 }
0x111b   :  { %v251_v30 = vpop.permute.xlu2 %250 }
0x111c   :  { %253 = vst.msk [vmem:[#allocation4 + $0x6] sm:$0x3] %vm29_vm0, %v251_v30 }
0x111e   :  { %298 = vrot.lane.b32.xlu0 %v1253_v38, %s1130_s28 }
0x1123   :  { %v395_v27 = vpop.permute.xlu2 %394 }
0x1124   :  { %397 = vst.msk [vmem:[#allocation4 + $0xc] sm:$0x3] %vm29_vm0, %v395_v27 }
0x112b   :  { %v537_v62 = vpop.permute.xlu2 %536 }
0x1180   :  { %v432_v31 = vpop.permute.xlu0 %431 }
0x1181   :  { %v1305_v32 = vadd.f32 %v432_v31, %v424_v19 }
0x1183   :  { %1067 = vtanh.f32 %v1305_v32 }
0x1188   :  { %v155_v33 = vpop.permute.xlu0 %154 }
0x1189   :  { %v1068_v34 = vpop.eup %1067  ;;  %157 = vst.msk [vmem:[#allocation4 + $0x2] sm:$0x3] %vm29_vm0, %v155_v33 }
0x118a   :  { %437 = vrot.lane.b32.xlu1 %v1068_v34, %s1129_s27 }
0x1190   :  { %v299_v45 = vpop.permute.xlu0 %298 }
0x1191   :  { %301 = vst.msk [vmem:[#allocation4 + $0x8] sm:$0x3] %vm29_vm0, %v299_v45 }
0x1192   :  { %202 = vrot.lane.b32.xlu1 %v1223_v63, %s1130_s28 }
0x119a   :  { %346 = vrot.lane.b32.xlu1 %v1268_v57, %s1130_s28 }
0x11fc   :  { %v438_v37 = vpop.permute.xlu1 %437 }
0x11fd   :  { %v440_v38 = vmul.f32 %v438_v37, %v423_v25 }
0x11ff   :  { %442 = vrot.lane.b32.xlu0 %v440_v38, %s1130_s28 }
0x1204   :  { %v203_v63 = vpop.permute.xlu1 %202 }
0x1205   :  { %205 = vst.msk [vmem:[#allocation4 + $0x4] sm:$0x3] %vm29_vm0, %v203_v63 }
0x120c   :  { %v347_v39 = vpop.permute.xlu1 %346  ;;  %v452_v47 = vld [vmem:[#allocation4] sm:$0xff] }
0x120d   :  { %349 = vst.msk [vmem:[#allocation4 + $0xa] sm:$0x3] %vm29_vm0, %v347_v39 }
0x1271   :  { %v443_v46 = vpop.permute.xlu0 %442 }
0x1272   :  { %445 = vst.msk [vmem:[#allocation4 + $0xe] sm:$0x3] %vm29_vm0, %v443_v46 }
0x1273   :  { %446 = vst.msk [vmem:[#allocation2] sm:$0x3] %vm29_vm0, %v443_v46 }
0x1279   :  { %v453_v48 = vld [vmem:[#allocation4 + $0x8] sm:$0xff] }
0x127a   :  { %v454_v49 = vpack.c.bf16 %v453_v48, %v452_v47 }
0x127c   :  { %991 = vmatmul.msk.bf16.vlgmr.msra.gmra.mxu0 %vm61_vm1, %v454_v49 }
0x127d   :  { %859 = vmatpush.bf16.msra.mxu0 %v1026_v36 }
0x1281   :  { %860 = vmatpush.bf16.msra.mxu0 %v1025_v40 }
0x12f9   :  { %v487_v53 = vpop.f32.mrf.mxu0 }
0x12fa   :  { %v1341_v54 = vadd.f32 %v1338_v52, %v487_v53 }
0x12fc   :  { %v530_v55 = vadd.f32 %v526_v50, %v1341_v54 }
0x12fe   :  { %v531_v56 = vmul.f32 %v530_v55, %v1182_v9 }
0x1300   :  { %1069 = vtanh.f32 %v531_v56 }
0x1301   :  { %v489_v50 = vpop.f32.mrf.mxu0 }
0x1306   :  { %v1070_v57 = vpop.eup %1069 }
0x1307   :  { %v533_v58 = vmul.f32 %v1070_v57, %v1182_v9 }
0x1309   :  { %v534_v59 = vadd.f32 %v533_v58, %v1185_v15 }
0x130b   :  { %541 = vrot.lane.b32.xlu1 %v534_v59, %s1129_s27  ;;  %v539_v0 = vmul.f32 %v537_v62, %v534_v59 }
0x137d   :  { %v542_v60 = vpop.permute.xlu1 %541 }
0x137e   :  { %v544_v61 = vmul.f32 %v542_v60, %v534_v59 }
0x1380   :  { %546 = vrot.lane.b32.xlu0 %v544_v61, %s1130_s28 }
0x13f2   :  { %v547_v1 = vpop.permute.xlu0 %546 }
0x13f3   :  { %v549_v2 = vadd.f32 %v547_v1, %v539_v0 }
0x13f5   :  { %1071 = vtanh.f32 %v549_v2  ;;  %v585_v21 = vrot.slane %v549_v2, 6 }
0x13fb   :  { %v1072_v3 = vpop.eup %1071 }
0x13fc   :  { %552 = vrot.lane.b32.xlu1 %v1072_v3, %s1129_s27 }
0x146e   :  { %v553_v4 = vpop.permute.xlu1 %552 }
0x146f   :  { %v555_v5 = vmul.f32 %v553_v4, %v534_v59 }
0x1471   :  { %v556_v6 = vpack.c.bf16 %v555_v5, %v555_v5 }
0x1473   :  { %558 = vrot.lane.b32.xlu2 %v556_v6, %s1130_s28 }
0x14cd   :  { %v559_v7 = vpop.permute.xlu2 %558 }
0x14ce   :  { %1005 = vmatmul.msk.bf16.vlgmr.msra.gmra.mxu2 %vm61_vm1, %v559_v7 }
0x1551   :  { %v572_v8 = vpop.f32.mrf.mxu2 }
0x1552   :  { %v577_v10 = vrot.slane %v572_v8, 6 }
0x1554   :  { %v579_v11 = vadd.f32 %v577_v10, %v1341_v54  ;;  %v1380_v10 = vadd.f32 %v1338_v52, %v489_v50 }
0x1556   :  { %v580_v12 = vmul.f32 %v579_v11, %v1182_v9 }
0x1558   :  { %1073 = vtanh.f32 %v580_v12 }
0x1559   :  { %v574_v13 = vpop.f32.mrf.mxu2 }
0x155e   :  { %v1074_v14 = vpop.eup %1073 }
0x155f   :  { %v582_v16 = vmul.f32 %v1074_v14, %v1182_v9 }
0x1561   :  { %v583_v17 = vadd.f32 %v582_v16, %v1185_v15 }
0x1563   :  { %589 = vrot.lane.b32.xlu0 %v583_v17, %s1129_s27  ;;  %v587_v22 = vmul.f32 %v585_v21, %v583_v17 }
0x15d5   :  { %v590_v18 = vpop.permute.xlu0 %589 }
0x15d6   :  { %v592_v20 = vmul.f32 %v590_v18, %v583_v17 }
0x15d8   :  { %594 = vrot.lane.b32.xlu1 %v592_v20, %s1130_s28 }
0x164a   :  { %v595_v23 = vpop.permute.xlu1 %594 }
0x164b   :  { %v597_v24 = vadd.f32 %v595_v23, %v587_v22 }
0x164d   :  { %1075 = vtanh.f32 %v597_v24  ;;  %v634_v39 = vrot.slane %v597_v24, 6 }
0x1653   :  { %v1076_v25 = vpop.eup %1075 }
0x1654   :  { %600 = vrot.lane.b32.xlu2 %v1076_v25, %s1129_s27 }
0x16ae   :  { %v601_v26 = vpop.permute.xlu2 %600 }
0x16af   :  { %v603_v28 = vmul.f32 %v601_v26, %v583_v17 }
0x16b1   :  { %v604_v29 = vpack.c.bf16 %v603_v28, %v603_v28 }
0x16b3   :  { %v606_v30 = vrot.slane %v604_v29, 1 }
0x16b5   :  { %607 = vrot.lane.b32.xlu0 %v606_v30, %s1130_s28 }
0x1727   :  { %v608_v27 = vpop.permute.xlu0 %607 }
0x1728   :  { %1006 = vmatmul.msk.bf16.vlgmr.msra.gmra.mxu3 %vm61_vm1, %v608_v27 }
0x17ab   :  { %v621_v19 = vpop.f32.mrf.mxu3 }
0x17ac   :  { %v626_v31 = vrot.slane %v621_v19, 4 }
0x17ae   :  { %v628_v33 = vadd.f32 %v626_v31, %v1341_v54 }
0x17b0   :  { %v629_v34 = vmul.f32 %v628_v33, %v1182_v9 }
0x17b2   :  { %1077 = vtanh.f32 %v629_v34 }
0x17b3   :  { %v623_v45 = vpop.f32.mrf.mxu3 }
0x17b8   :  { %v1078_v35 = vpop.eup %1077 }
0x17b9   :  { %v631_v36 = vmul.f32 %v1078_v35, %v1182_v9 }
0x17bb   :  { %v632_v37 = vadd.f32 %v631_v36, %v1185_v15 }
0x17bd   :  { %638 = vrot.lane.b32.xlu1 %v632_v37, %s1129_s27  ;;  %v636_v40 = vmul.f32 %v634_v39, %v632_v37 }
0x182f   :  { %v639_v38 = vpop.permute.xlu1 %638 }
0x1830   :  { %v641_v63 = vmul.f32 %v639_v38, %v632_v37 }
0x1832   :  { %643 = vrot.lane.b32.xlu2 %v641_v63, %s1130_s28 }
0x188c   :  { %v644_v41 = vpop.permute.xlu2 %643 }
0x188d   :  { %v646_v42 = vadd.f32 %v644_v41, %v636_v40 }
0x188f   :  { %1079 = vtanh.f32 %v646_v42  ;;  %v683_v0 = vrot.slane %v646_v42, 6 }
0x1895   :  { %v1080_v43 = vpop.eup %1079 }
0x1896   :  { %649 = vrot.lane.b32.xlu0 %v1080_v43, %s1129_s27 }
0x1908   :  { %v650_v44 = vpop.permute.xlu0 %649 }
0x1909   :  { %v652_v46 = vmul.f32 %v650_v44, %v632_v37 }
0x190b   :  { %v653_v47 = vpack.c.bf16 %v652_v46, %v652_v46 }
0x190d   :  { %v655_v48 = vrot.slane %v653_v47, 2 }
0x190f   :  { %656 = vrot.lane.b32.xlu1 %v655_v48, %s1130_s28 }
0x1981   :  { %v657_v49 = vpop.permute.xlu1 %656 }
0x1982   :  { %1007 = vmatmul.msk.bf16.vlgmr.msrb.gmra.mxu0 %vm61_vm1, %v657_v49 }
0x19ff   :  { %v670_v51 = vpop.f32.mrf.mxu0 }
0x1a00   :  { %v675_v53 = vrot.slane %v670_v51, 2 }
0x1a02   :  { %v677_v55 = vadd.f32 %v675_v53, %v1341_v54 }
0x1a04   :  { %v678_v56 = vmul.f32 %v677_v55, %v1182_v9 }
0x1a06   :  { %1081 = vtanh.f32 %v678_v56 }
0x1a07   :  { %v672_v57 = vpop.f32.mrf.mxu0 }
0x1a0c   :  { %v1082_v58 = vpop.eup %1081 }
0x1a0d   :  { %v680_v59 = vmul.f32 %v1082_v58, %v1182_v9 }
0x1a0f   :  { %v681_v60 = vadd.f32 %v680_v59, %v1185_v15 }
0x1a11   :  { %687 = vrot.lane.b32.xlu2 %v681_v60, %s1129_s27  ;;  %v685_v1 = vmul.f32 %v683_v0, %v681_v60 }
0x1a6b   :  { %v688_v61 = vpop.permute.xlu2 %687 }
0x1a6c   :  { %v690_v62 = vmul.f32 %v688_v61, %v681_v60 }
0x1a6e   :  { %692 = vrot.lane.b32.xlu0 %v690_v62, %s1130_s28 }
0x1ae0   :  { %v693_v2 = vpop.permute.xlu0 %692 }
0x1ae1   :  { %v695_v3 = vadd.f32 %v693_v2, %v685_v1 }
0x1ae3   :  { %1083 = vtanh.f32 %v695_v3  ;;  %v729_v52 = vrot.slane %v695_v3, 6 }
0x1ae9   :  { %v1084_v54 = vpop.eup %1083 }
0x1aea   :  { %698 = vrot.lane.b32.xlu1 %v1084_v54, %s1129_s27 }
0x1b5c   :  { %v699_v4 = vpop.permute.xlu1 %698 }
0x1b5d   :  { %v701_v5 = vmul.f32 %v699_v4, %v681_v60 }
0x1b5f   :  { %v702_v6 = vpack.c.bf16 %v701_v5, %v701_v5 }
0x1b61   :  { %v704_v7 = vrot.slane %v702_v6, 3 }
0x1b63   :  { %705 = vrot.lane.b32.xlu2 %v704_v7, %s1130_s28 }
0x1bbd   :  { %v706_v8 = vpop.permute.xlu2 %705 }
0x1bbe   :  { %1008 = vmatmul.msk.bf16.vlgmr.msrb.gmra.mxu1 %vm61_vm1, %v706_v8 }
0x1c3b   :  { %v719_v11 = vpop.f32.mrf.mxu1 }
0x1c3c   :  { %v723_v12 = vadd.f32 %v719_v11, %v1380_v10 }
0x1c3e   :  { %v724_v13 = vmul.f32 %v723_v12, %v1182_v9 }
0x1c40   :  { %1085 = vtanh.f32 %v724_v13 }
0x1c43   :  { %v721_v14 = vpop.f32.mrf.mxu1 }
0x1c46   :  { %v1086_v16 = vpop.eup %1085 }
0x1c47   :  { %v726_v17 = vmul.f32 %v1086_v16, %v1182_v9 }
0x1c49   :  { %v727_v18 = vadd.f32 %v726_v17, %v1185_v15 }
0x1c4b   :  { %733 = vrot.lane.b32.xlu0 %v727_v18, %s1129_s27  ;;  %v731_v22 = vmul.f32 %v729_v52, %v727_v18 }
0x1cbd   :  { %v734_v20 = vpop.permute.xlu0 %733 }
0x1cbe   :  { %v736_v21 = vmul.f32 %v734_v20, %v727_v18 }
0x1cc0   :  { %738 = vrot.lane.b32.xlu1 %v736_v21, %s1130_s28 }
0x1d32   :  { %v739_v23 = vpop.permute.xlu1 %738 }
0x1d33   :  { %v741_v24 = vadd.f32 %v739_v23, %v731_v22 }
0x1d35   :  { %1087 = vtanh.f32 %v741_v24  ;;  %v777_v63 = vrot.slane %v741_v24, 6 }
0x1d3b   :  { %v1088_v25 = vpop.eup %1087 }
0x1d3c   :  { %744 = vrot.lane.b32.xlu2 %v1088_v25, %s1129_s27 }
0x1d96   :  { %v745_v26 = vpop.permute.xlu2 %744 }
0x1d97   :  { %v747_v28 = vmul.f32 %v745_v26, %v727_v18 }
0x1d99   :  { %v748_v29 = vpack.c.bf16 %v747_v28, %v747_v28  ;;  %v1027_v28 = vld [vmem:[%s1437_s4] sm:$0xff] }
0x1d9b   :  { %750 = vrot.lane.b32.xlu0 %v748_v29, %s1130_s28 }
0x1e0d   :  { %v751_v30 = vpop.permute.xlu0 %750 }
0x1e0e   :  { %1009 = vmatmul.msk.bf16.vlgmr.msrb.gmra.mxu2 %vm61_vm1, %v751_v30 }
0x1e91   :  { %v764_v27 = vpop.f32.mrf.mxu2 }
0x1e92   :  { %v769_v19 = vrot.slane %v764_v27, 6 }
0x1e94   :  { %v771_v31 = vadd.f32 %v769_v19, %v1380_v10  ;;  %v1036_v19 = vld [vmem:[%s1438_s5] ss:$0 sm:$0xff] }
0x1e96   :  { %v772_v33 = vmul.f32 %v771_v31, %v1182_v9 }
0x1e98   :  { %1089 = vtanh.f32 %v772_v33 }
0x1e99   :  { %v766_v34 = vpop.f32.mrf.mxu2 }
0x1e9e   :  { %v1090_v45 = vpop.eup %1089 }
0x1e9f   :  { %v774_v35 = vmul.f32 %v1090_v45, %v1182_v9 }
0x1ea1   :  { %v775_v36 = vadd.f32 %v774_v35, %v1185_v15 }
0x1ea3   :  { %781 = vrot.lane.b32.xlu1 %v775_v36, %s1129_s27  ;;  %v779_v39 = vmul.f32 %v777_v63, %v775_v36 }
0x1f15   :  { %v782_v37 = vpop.permute.xlu1 %781 }
0x1f16   :  { %v784_v38 = vmul.f32 %v782_v37, %v775_v36 }
0x1f18   :  { %786 = vrot.lane.b32.xlu2 %v784_v38, %s1130_s28 }
0x1f72   :  { %v787_v40 = vpop.permute.xlu2 %786 }
0x1f73   :  { %v789_v41 = vadd.f32 %v787_v40, %v779_v39 }
0x1f75   :  { %1091 = vtanh.f32 %v789_v41  ;;  %v826_v61 = vrot.slane %v789_v41, 6 }
0x1f7b   :  { %v1092_v42 = vpop.eup %1091 }
0x1f7c   :  { %792 = vrot.lane.b32.xlu0 %v1092_v42, %s1129_s27 }
0x1fee   :  { %v793_v43 = vpop.permute.xlu0 %792 }
0x1fef   :  { %v795_v44 = vmul.f32 %v793_v43, %v775_v36 }
0x1ff1   :  { %v796_v46 = vpack.c.bf16 %v795_v44, %v795_v44 }
0x1ff3   :  { %v798_v47 = vrot.slane %v796_v46, 1 }
0x1ff5   :  { %799 = vrot.lane.b32.xlu1 %v798_v47, %s1130_s28 }
0x2067   :  { %v800_v48 = vpop.permute.xlu1 %799 }
0x2068   :  { %1010 = vmatmul.msk.bf16.vlgmr.msrb.gmra.mxu3 %vm61_vm1, %v800_v48 }
0x20eb   :  { %v813_v49 = vpop.f32.mrf.mxu3 }
0x20ec   :  { %v818_v50 = vrot.slane %v813_v49, 4 }
0x20ee   :  { %v820_v51 = vadd.f32 %v818_v50, %v1380_v10 }
0x20f0   :  { %v821_v53 = vmul.f32 %v820_v51, %v1182_v9 }
0x20f2   :  { %1093 = vtanh.f32 %v821_v53 }
0x20f3   :  { %v815_v55 = vpop.f32.mrf.mxu3 }
0x20f8   :  { %v1094_v56 = vpop.eup %1093 }
0x20f9   :  { %v823_v57 = vmul.f32 %v1094_v56, %v1182_v9 }
0x20fb   :  { %v824_v58 = vadd.f32 %v823_v57, %v1185_v15 }
0x20fd   :  { %830 = vrot.lane.b32.xlu2 %v824_v58, %s1129_s27  ;;  %v828_v62 = vmul.f32 %v826_v61, %v824_v58 }
0x2157   :  { %v831_v59 = vpop.permute.xlu2 %830 }
0x2158   :  { %v833_v60 = vmul.f32 %v831_v59, %v824_v58 }
0x215a   :  { %835 = vrot.lane.b32.xlu0 %v833_v60, %s1130_s28 }
0x21cc   :  { %v836_v0 = vpop.permute.xlu0 %835 }
0x21cd   :  { %v838_v1 = vadd.f32 %v836_v0, %v828_v62 }
0x21cf   :  { %1095 = vtanh.f32 %v838_v1  ;;  %v875_v21 = vrot.slane %v838_v1, 6 }
0x21d5   :  { %v1096_v2 = vpop.eup %1095 }
0x21d6   :  { %841 = vrot.lane.b32.xlu1 %v1096_v2, %s1129_s27 }
0x2248   :  { %v842_v3 = vpop.permute.xlu1 %841 }
0x2249   :  { %v844_v54 = vmul.f32 %v842_v3, %v824_v58 }
0x224b   :  { %v845_v4 = vpack.c.bf16 %v844_v54, %v844_v54 }
0x224d   :  { %v847_v5 = vrot.slane %v845_v4, 2 }
0x224f   :  { %848 = vrot.lane.b32.xlu2 %v847_v5, %s1130_s28 }
0x22a9   :  { %v849_v6 = vpop.permute.xlu2 %848 }
0x22aa   :  { %1011 = vmatmul.msk.bf16.vlgmr.msra.gmra.mxu0 %vm61_vm1, %v849_v6 }
0x2327   :  { %v862_v7 = vpop.f32.mrf.mxu0 }
0x2328   :  { %v867_v8 = vrot.slane %v862_v7, 2 }
0x232a   :  { %v869_v11 = vadd.f32 %v867_v8, %v1380_v10 }
0x232c   :  { %v870_v12 = vmul.f32 %v869_v11, %v1182_v9 }
0x232e   :  { %1097 = vtanh.f32 %v870_v12 }
0x232f   :  { %v864_v13 = vpop.f32.mrf.mxu0 }
0x2334   :  { %v1098_v14 = vpop.eup %1097 }
0x2335   :  { %v872_v16 = vmul.f32 %v1098_v14, %v1182_v9 }
0x2337   :  { %v873_v17 = vadd.f32 %v872_v16, %v1185_v15 }
0x2339   :  { %879 = vrot.lane.b32.xlu0 %v873_v17, %s1129_s27  ;;  %v877_v10 = vmul.f32 %v875_v21, %v873_v17 }
0x23ab   :  { %v880_v18 = vpop.permute.xlu0 %879 }
0x23ac   :  { %v882_v20 = vmul.f32 %v880_v18, %v873_v17 }
0x23ae   :  { %884 = vrot.lane.b32.xlu1 %v882_v20, %s1130_s28 }
0x23b6   :  { %448 = vrot.lane.b32.xlu1 %v1305_v32, %s1131_s3  ;;  %v1028_v32 = vld [vmem:[%s1437_s4 + $0x8] sm:$0xff] }
0x23b7   :  { %942 = vmatpush.bf16.msra.mxu1 %v1028_v32 }
0x23bb   :  { %943 = vmatpush.bf16.msra.mxu1 %v1027_v28 }
0x2420   :  { %v885_v52 = vpop.permute.xlu1 %884 }
0x2421   :  { %v887_v22 = vadd.f32 %v885_v52, %v877_v10 }
0x2423   :  { %1099 = vtanh.f32 %v887_v22 }
0x2428   :  { %v449_v23 = vpop.permute.xlu1 %448 }
0x2429   :  { %v1100_v24 = vpop.eup %1099  ;;  %451 = vst.msk [vmem:[#allocation3] sm:$0x3] %vm29_vm0, %v449_v23 }
0x242a   :  { %890 = vrot.lane.b32.xlu2 %v1100_v24, %s1129_s27 }
0x2484   :  { %v891_v9 = vpop.permute.xlu2 %890 }
0x2485   :  { %v893_v15 = vmul.f32 %v891_v9, %v873_v17 }
0x2487   :  { %v912_v25 = vpack.c.bf16 %v893_v15, %v893_v15  ;;  %895 = vrot.lane.b32.xlu2 %v893_v15, %s1130_s28 }
0x2489   :  { %v918_v26 = vrot.slane %v912_v25, 3 }
0x248b   :  { %919 = vrot.lane.b32.xlu0 %v918_v26, %s1130_s28 }
0x2493   :  { %901 = vrot.lane.b32.xlu0 %v887_v22, %s1131_s3 }
0x24e1   :  { %v896_v29 = vpop.permute.xlu2 %895 }
0x24e2   :  { %899 = vst.msk [vmem:[#allocation2 - $0x4] sm:$0xc0] %vm898_vm5, %v896_v29 }
0x24fd   :  { %v920_v30 = vpop.permute.xlu0 %919 }
0x24fe   :  { %1020 = vmatmul.msk.bf16.vlgmr.msra.gmra.mxu1 %vm61_vm1, %v920_v30 }
0x2505   :  { %v902_v27 = vpop.permute.xlu0 %901 }
0x2506   :  { %904 = vst.msk [vmem:[#allocation3 - $0x4] sm:$0xc0] %vm898_vm5, %v902_v27 }
0x257b   :  { %v945_v31 = vpop.f32.mrf.mxu1 }
0x257c   :  { %v946_v33 = vadd.f32 %v1036_v19, %v945_v31 }
0x257e   :  { %950 = vst.msk [vmem:[#allocation5] sm:$0x3] %vm949_vm6, %v946_v33 }
0x257f   :  { %961 = dma.vmem_to_hbm [thread:$0]  %s957_s9, 32, %s959_s12, [#allocation6]  }
0x2583   :  { %v947_v34 = vpop.f32.mrf.mxu1 }
0x2584   :  { %1125 = dma.done.wait [#allocation6], 32  }
0x2585   :  { %1126 = vsyncadd [#allocation6], 4294967264 }
0x2586   :  { %966 = vsyncpa [#allocation6], 1 }

</bundles_post_ra>
